<compile_context>
chip_gen: v7x
topology: tpu7x:2x2x1
jax: 0.10.0
libtpu: 0.0.40
codegen_flags: <defaults>
</compile_context>

<pallas_src>
import jax
import jax.numpy as jnp
import numpy as np
from jax.experimental import pallas as pl
from jax.experimental.pallas import tpu as pltpu


def _round_up(x, m):
    return ((x + m - 1) // m) * m


# ----------------------------- Pallas kernel -------------------------------


def _make_deepcrossing_kernel(num_res: int, x_pad: int):
    """Kernel closure over the static number of residual blocks / input width."""

    def kernel(x_ref, w_ref, b_ref, out_ref):
        f32 = jnp.float32
        bf16 = jnp.bfloat16

        x = x_ref[...]                                    # (TILE_B, X_PAD) bf16

        # Fused (one-hot embeddings + column stack) as a single MXU matmul.
        # Only the first x_pad rows of the stacked weight slab are non-zero:
        # static, sublane-aligned slice of the VMEM-resident weights.
        w0 = w_ref[0, 0:x_pad, :]                         # (X_PAD, P) bf16
        r = jnp.dot(x, w0, preferred_element_type=f32)    # (TILE_B, P) f32

        # Residual blocks: relu(relu(r@W1 + b1)@W2 + b2 + r).
        # bf16 MXU operands, f32 accumulation / bias / relu / residual.
        for l in range(num_res):
            w1 = w_ref[1 + 2 * l]                         # (P, P) bf16
            w2 = w_ref[2 + 2 * l]                         # (P, P) bf16
            b1 = b_ref[2 * l]                             # (1, P) f32
            b2 = b_ref[2 * l + 1]                         # (1, P) f32
            h = jnp.maximum(
                jnp.dot(r.astype(bf16), w1, preferred_element_type=f32) + b1,
                0.0)
            y = jnp.dot(h.astype(bf16), w2, preferred_element_type=f32) + b2
            r = jnp.maximum(y + r, 0.0)

        # Final linear. lin_w is replicated across the first 128 output lanes,
        # so every lane of `logit` holds that row's logit.
        w_lin = w_ref[2 * num_res + 1, :, 0:128]          # (P, 128) bf16
        b_lin = b_ref[2 * num_res, :, 0:128]              # (1, 128) f32
        logit = (jnp.dot(r.astype(bf16), w_lin, preferred_element_type=f32)
                 + b_lin)                                 # (TILE_B, 128) f32

        # Lane-compact the logit before it leaves the kernel: the transpose is
        # cheap XLU work, and row 0 of the transpose holds the per-row logits
        # laid out densely along lanes. Sigmoid + HBM write then touch only
        # TILE_B values instead of the 128x-replicated slab.
        logit_t = logit.T                                 # (128, TILE_B) f32
        out_ref[...] = jax.nn.sigmoid(logit_t[0:1, :])[None, :, :]

    return kernel


# --------------------------- parameter packing ------------------------------


def pack_params(params):
    """Builds the packed W_stack / weight / bias slabs once (call at init)."""
    F = params["user_emb"].shape[1]
    dim_stack = 5 * F + 1
    hidden_units = [w1.shape[1] for (w1, _, _, _) in params["res"]]
    num_res = len(hidden_units)
    x_width = 2 * F + 43  # [user F | item F | age 1 | gender 2 | occ 21 | movie 19]
    P = _round_up(max([x_width, dim_stack] + hidden_units), 128)
    x_pad = _round_up(x_width, 64)   # narrow activation input (64 lanes here)

    f32 = jnp.float32
    eye_f = jnp.eye(F, dtype=f32)

    # W_stack: identity blocks for pass-through columns + embedding tables for
    # the (multi-)one-hot features. r = X @ W_stack reproduces torch.cat(...).
    w_stack = jnp.zeros((P, P), f32)
    w_stack = w_stack.at[0:F, 0:F].set(eye_f)                                   # user
    w_stack = w_stack.at[F:2 * F, F:2 * F].set(eye_f)                           # item
    w_stack = w_stack.at[2 * F, 2 * F].set(1.0)                                 # age
    w_stack = w_stack.at[2 * F + 1:2 * F + 3, 2 * F + 1:3 * F + 1].set(params["gender_emb"])
    w_stack = w_stack.at[2 * F + 3:2 * F + 24, 3 * F + 1:4 * F + 1].set(params["occupation_emb"])
    w_stack = w_stack.at[2 * F + 24:2 * F + 43, 4 * F + 1:5 * F + 1].set(params["movie_emb"])

    w_list = [w_stack]
    b_list = []
    for (w1, b1, w2, b2) in params["res"]:
        unit = w1.shape[1]
        w1p = jnp.zeros((P, P), f32).at[0:dim_stack, 0:unit].set(w1)
        w2p = jnp.zeros((P, P), f32).at[0:unit, 0:dim_stack].set(w2)
        b1p = jnp.zeros((1, P), f32).at[0, 0:unit].set(b1)
        b2p = jnp.zeros((1, P), f32).at[0, 0:dim_stack].set(b2)
        w_list += [w1p, w2p]
        b_list += [b1p, b2p]

    # Final linear: replicate lin_w/lin_b across all lanes; the kernel compacts
    # the replicated logit back to one value per row before writing to HBM.
    lin_wp = jnp.zeros((P, P), f32).at[0:dim_stack, :].set(
        jnp.broadcast_to(params["lin_w"], (dim_stack, P)))
    lin_bp = jnp.broadcast_to(params["lin_b"].reshape(1, 1), (1, P)).astype(f32)
    w_list.append(lin_wp)
    b_list.append(lin_bp)

    return {
        "w_all": jnp.stack(w_list, axis=0).astype(jnp.bfloat16),  # (2n+2, P, P) bf16
        "b_all": jnp.stack(b_list, axis=0),                       # (2n+1, 1, P) f32
        "user_emb": params["user_emb"],
        "item_emb": params["item_emb"],
        "F": F,
        "P": P,
        "num_res": num_res,
        "x_width": x_width,
        "x_pad": x_pad,
    }


# ------------------------------ forward pass --------------------------------


def _run_pallas(x, w_all, b_all, *, num_res, x_pad, P, tile_b, num_tiles,
                vmem_limit, single_buffer_weights):
    kernel = _make_deepcrossing_kernel(num_res, x_pad)
    resident_kwargs = (
        dict(pipeline_mode=pl.Buffered(1)) if single_buffer_weights else {})
    return pl.pallas_call(
        kernel,
        out_shape=jax.ShapeDtypeStruct((num_tiles, 1, tile_b), jnp.float32),
        grid=(num_tiles,),
        in_specs=[
            # activations: tiled over batch, bf16, 64-lane wide
            pl.BlockSpec((tile_b, x_pad), lambda i: (i, 0)),
            # packed weights / biases: VMEM-resident across all grid steps
            pl.BlockSpec((2 * num_res + 2, P, P), lambda i: (0, 0, 0),
                         **resident_kwargs),
            pl.BlockSpec((2 * num_res + 1, 1, P), lambda i: (0, 0, 0),
                         **resident_kwargs),
        ],
        # lane-compacted output: one f32 per batch row
        out_specs=pl.BlockSpec((1, 1, tile_b), lambda i: (i, 0, 0)),
        compiler_params=pltpu.CompilerParams(
            dimension_semantics=("parallel",),
            vmem_limit_bytes=vmem_limit),
    )(x, w_all, b_all)


def deepcrossing_forward(feature_vector, packed, tile_b=None):
    """Forward pass matching DeepCrossing.forward.

    feature_vector: float32 [B, 45]
    packed: output of pack_params(params)
    """
    B = feature_vector.shape[0]
    P = packed["P"]
    num_res = packed["num_res"]
    x_width = packed["x_width"]
    x_pad = packed["x_pad"]

    # ---- glue: data-dependent embedding row gathers stay in plain JAX ----
    # TODO(synk): move the user/item row gather + feature assembly in-kernel
    # (PrefetchScalarGridSpec with user/item ids as scalar-prefetch and manual
    # per-tile DMA gather from HBM-resident tables) so the (b_pad, x_pad)
    # activation slab never round-trips through HBM.
    user_idx = feature_vector[:, 0].astype(jnp.int32)
    item_idx = feature_vector[:, 1].astype(jnp.int32)
    user_embed = packed["user_emb"][user_idx]           # (B, F)
    item_embed = packed["item_emb"][item_idx]           # (B, F)

    # X = [user_emb | item_emb | age | gender | occupation | movie]
    x = jnp.concatenate(
        [user_embed, item_embed, feature_vector[:, 2:45]], axis=1)  # (B, x_width)

    if tile_b is None:
        desired = 1024                  # big tiles amortize ~0.35us/step overhead
        if B > 128:
            # keep >= 2 grid steps so v7x can shard batch tiles over its 2 TCs
            half = _round_up(pl.cdiv(B, 2), 128)
        else:
            half = 128
        tile_b = max(128, min(desired, half))
    tile_b = _round_up(tile_b, 128)     # 128-row blocks; needed for compaction
    b_pad = _round_up(B, tile_b)
    num_tiles = b_pad // tile_b

    # bf16 activations (halves the activation HBM read); zero pad batch rows
    # and lanes up to the narrow kernel input width.
    x = jnp.pad(x.astype(jnp.bfloat16),
                ((0, b_pad - B), (0, x_pad - x_width)))

    # VMEM budget: x double-buffer + (at most double-buffered) weight/bias
    # slabs + compact output, with slack; clamp under the 32 MiB scoped default
    # (v7x) while overriding v5e's 16 MiB default explicitly.
    n_w = 2 * num_res + 2
    n_b = 2 * num_res + 1
    footprint = (2 * tile_b * x_pad * 2 + 2 * n_w * P * P * 2
                 + 2 * n_b * P * 4 + 2 * tile_b * 4)
    vmem_limit = int(min(32 << 20, max(8 << 20, 2 * footprint + (2 << 20))))

    kwargs = dict(num_res=num_res, x_pad=x_pad, P=P, tile_b=tile_b,
                  num_tiles=num_tiles, vmem_limit=vmem_limit)
    try:
        # Weights/biases have a constant index_map -> one VMEM buffer is enough.
        out = jax.block_until_ready(
            _run_pallas(x, packed["w_all"], packed["b_all"],
                        single_buffer_weights=True, **kwargs))
    except Exception:
        # Fallback if this JAX build rejects pl.Buffered(1) single-buffering.
        out = _run_pallas(x, packed["w_all"], packed["b_all"],
                          single_buffer_weights=False, **kwargs)

    # out[i, 0, j] = sigmoid(logit) of batch row i*tile_b + j.
    return out.reshape(b_pad)[:B].reshape(B, 1)


# ------------------------- reference (pure JAX) -----------------------------


def deepcrossing_reference(feature_vector, params):
    hp = jax.lax.Precision.HIGHEST
    user_embed = params["user_emb"][feature_vector[:, 0].astype(jnp.int32)]
    item_embed = params["item_emb"][feature_vector[:, 1].astype(jnp.int32)]
    age = feature_vector[:, 2:3]
    gender_embed = jnp.dot(feature_vector[:, 3:5], params["gender_emb"], precision=hp)
    occupation_embed = jnp.dot(feature_vector[:, 5:26], params["occupation_emb"], precision=hp)
    movie_embed = jnp.dot(feature_vector[:, 26:45], params["movie_emb"], precision=hp)
    r = jnp.concatenate([user_embed, item_embed, age, gender_embed,
                         occupation_embed, movie_embed], axis=1)
    for (w1, b1, w2, b2) in params["res"]:
        h = jax.nn.relu(jnp.dot(r, w1, precision=hp) + b1)
        y = jnp.dot(h, w2, precision=hp) + b2
        r = jax.nn.relu(y + r)
    return jax.nn.sigmoid(jnp.dot(r, params["lin_w"], precision=hp) + params["lin_b"])


# ----------------------------- parameter init -------------------------------


def _xavier_normal(key, shape):
    fan_out, fan_in = shape[0], shape[1]
    std = float(np.sqrt(2.0 / (fan_in + fan_out)))
    return std * jax.random.normal(key, shape, dtype=jnp.float32)


def init_params(key, num_user, num_item, num_feature, hidden_units):
    dim_stack = 5 * num_feature + 1
    keys = jax.random.split(key, 8 + 4 * len(hidden_units))
    params = {
        "user_emb": _xavier_normal(keys[0], (num_user, num_feature)),
        "item_emb": _xavier_normal(keys[1], (num_item, num_feature)),
        "gender_emb": _xavier_normal(keys[2], (2, num_feature)),
        "occupation_emb": _xavier_normal(keys[3], (21, num_feature)),
        "movie_emb": _xavier_normal(keys[4], (19, num_feature)),
    }
    res = []
    ki = 5
    for unit in hidden_units:
        w1 = 0.1 * jax.random.normal(keys[ki], (dim_stack, unit), dtype=jnp.float32)
        b1 = 0.01 * jax.random.normal(keys[ki + 1], (unit,), dtype=jnp.float32)
        w2 = 0.1 * jax.random.normal(keys[ki + 2], (unit, dim_stack), dtype=jnp.float32)
        b2 = 0.01 * jax.random.normal(keys[ki + 3], (dim_stack,), dtype=jnp.float32)
        res.append((w1, b1, w2, b2))
        ki += 4
    params["res"] = res
    params["lin_w"] = 0.1 * jax.random.normal(keys[ki], (dim_stack, 1), dtype=jnp.float32)
    params["lin_b"] = 0.01 * jax.random.normal(keys[ki + 1], (1,), dtype=jnp.float32)
    return params


# ----------------------------------- main -----------------------------------


if __name__ == "__main__":
    num_user, num_item, num_feature = 50, 60, 8
    hidden_units = (32, 16)
    B = 8

    key = jax.random.PRNGKey(0)
    kp, k1, k2, k3, k4, k5, k6 = jax.random.split(key, 7)

    params = init_params(kp, num_user, num_item, num_feature, hidden_units)
    packed = pack_params(params)

    # Build a [B, 45] feature vector: [user_id, item_id, age,
    #   gender one-hot(2), occupation one-hot(21), movie multi-hot(19)]
    user_ids = jax.random.randint(k1, (B,), 0, num_user).astype(jnp.float32)
    item_ids = jax.random.randint(k2, (B,), 0, num_item).astype(jnp.float32)
    age = jax.random.uniform(k3, (B,), minval=18.0, maxval=60.0)
    gender = jax.nn.one_hot(jax.random.randint(k4, (B,), 0, 2), 2, dtype=jnp.float32)
    occupation = jax.nn.one_hot(jax.random.randint(k5, (B,), 0, 21), 21, dtype=jnp.float32)
    movie = (jax.random.uniform(k6, (B, 19)) < 0.3).astype(jnp.float32)

    feature_vector = jnp.concatenate(
        [user_ids[:, None], item_ids[:, None], age[:, None],
         gender, occupation, movie], axis=1)
    assert feature_vector.shape == (B, 45)

    out = deepcrossing_forward(feature_vector, packed)
    out = jax.block_until_ready(out)

    ref = deepcrossing_reference(feature_vector, params)
    assert out.shape == (B, 1)
    # Kernel uses bf16 MXU operands (f32 accumulation) vs the f32 HIGHEST
    # reference, so allow ~1e-2-level deviation on the sigmoid outputs.
    np.testing.assert_allclose(np.asarray(out), np.asarray(ref), rtol=4e-2, atol=4e-2)

    print("KERNEL_OK")
</pallas_src>

<mosaic_0001>
module attributes {stable_mosaic.version = 11 : i64} {
  func.func @kernel(%arg0: i32, %arg1: memref<128x64xbf16, #tpu.memory_space<vmem>>, %arg2: memref<6x128x128xbf16, #tpu.memory_space<vmem>>, %arg3: memref<5x1x128xf32, #tpu.memory_space<vmem>>, %arg4: memref<1x1x128xf32, #tpu.memory_space<vmem>>) attributes {dimension_semantics = [#tpu.dimension_semantics<parallel>], iteration_bounds = array<i64: 1>, scalar_prefetch = 0 : i64, scratch_operands = 0 : i64, tpu.core_type = #tpu.core_type<tc>, window_params = [{transform_indices = @transform_0, window_bounds = array<i64: 128, 64>}, {pipeline_mode = #tpu.pipeline_mode<synchronous>, transform_indices = @transform_1, window_bounds = array<i64: 6, 128, 128>}, {pipeline_mode = #tpu.pipeline_mode<synchronous>, transform_indices = @transform_2, window_bounds = array<i64: 5, 1, 128>}, {transform_indices = @transform_3, window_bounds = array<i64: 1, 1, 128>}]} {
    %c0 = arith.constant 0 : index
    %c0_0 = arith.constant 0 : index
    %0 = vector.load %arg1[%c0, %c0_0] : memref<128x64xbf16, #tpu.memory_space<vmem>>, vector<128x64xbf16>
    %c0_1 = arith.constant 0 : index
    %c0_2 = arith.constant 0 : index
    %c0_3 = arith.constant 0 : index
    %1 = vector.load %arg2[%c0_1, %c0_2, %c0_3] : memref<6x128x128xbf16, #tpu.memory_space<vmem>>, vector<1x64x128xbf16>
    %2 = vector.shape_cast %1 : vector<1x64x128xbf16> to vector<64x128xbf16>
    %cst = arith.constant dense<0.000000e+00> : vector<128x128xf32>
    %3 = tpu.matmul %0, %2, %cst {dimension_numbers = #tpu.dot_dimension_numbers<[1], [0], [0], [1], [0, 0, 1, 1], [], []>} : vector<128x64xbf16>, vector<64x128xbf16>, vector<128x128xf32> -> vector<128x128xf32>
    %c1 = arith.constant 1 : index
    %c0_4 = arith.constant 0 : index
    %c0_5 = arith.constant 0 : index
    %4 = vector.load %arg2[%c1, %c0_4, %c0_5] : memref<6x128x128xbf16, #tpu.memory_space<vmem>>, vector<1x128x128xbf16>
    %5 = vector.shape_cast %4 : vector<1x128x128xbf16> to vector<128x128xbf16>
    %c2 = arith.constant 2 : index
    %c0_6 = arith.constant 0 : index
    %c0_7 = arith.constant 0 : index
    %6 = vector.load %arg2[%c2, %c0_6, %c0_7] : memref<6x128x128xbf16, #tpu.memory_space<vmem>>, vector<1x128x128xbf16>
    %7 = vector.shape_cast %6 : vector<1x128x128xbf16> to vector<128x128xbf16>
    %c0_8 = arith.constant 0 : index
    %c0_9 = arith.constant 0 : index
    %c0_10 = arith.constant 0 : index
    %8 = vector.load %arg3[%c0_8, %c0_9, %c0_10] : memref<5x1x128xf32, #tpu.memory_space<vmem>>, vector<1x1x128xf32>
    %9 = vector.shape_cast %8 : vector<1x1x128xf32> to vector<1x128xf32>
    %c1_11 = arith.constant 1 : index
    %c0_12 = arith.constant 0 : index
    %c0_13 = arith.constant 0 : index
    %10 = vector.load %arg3[%c1_11, %c0_12, %c0_13] : memref<5x1x128xf32, #tpu.memory_space<vmem>>, vector<1x1x128xf32>
    %11 = vector.shape_cast %10 : vector<1x1x128xf32> to vector<1x128xf32>
    %12 = arith.truncf %3 : vector<128x128xf32> to vector<128x128xbf16>
    %cst_14 = arith.constant dense<0.000000e+00> : vector<128x128xf32>
    %13 = tpu.matmul %12, %5, %cst_14 {dimension_numbers = #tpu.dot_dimension_numbers<[1], [0], [0], [1], [0, 0, 1, 1], [], []>} : vector<128x128xbf16>, vector<128x128xbf16>, vector<128x128xf32> -> vector<128x128xf32>
    %14 = vector.broadcast %9 : vector<1x128xf32> to vector<128x128xf32>
    %15 = arith.addf %13, %14 : vector<128x128xf32>
    %cst_15 = arith.constant 0.000000e+00 : f32
    %16 = vector.broadcast %cst_15 : f32 to vector<128x128xf32>
    %17 = arith.maximumf %15, %16 : vector<128x128xf32>
    %18 = arith.truncf %17 : vector<128x128xf32> to vector<128x128xbf16>
    %cst_16 = arith.constant dense<0.000000e+00> : vector<128x128xf32>
    %19 = tpu.matmul %18, %7, %cst_16 {dimension_numbers = #tpu.dot_dimension_numbers<[1], [0], [0], [1], [0, 0, 1, 1], [], []>} : vector<128x128xbf16>, vector<128x128xbf16>, vector<128x128xf32> -> vector<128x128xf32>
    %20 = vector.broadcast %11 : vector<1x128xf32> to vector<128x128xf32>
    %21 = arith.addf %19, %20 : vector<128x128xf32>
    %22 = arith.addf %21, %3 : vector<128x128xf32>
    %cst_17 = arith.constant 0.000000e+00 : f32
    %23 = vector.broadcast %cst_17 : f32 to vector<128x128xf32>
    %24 = arith.maximumf %22, %23 : vector<128x128xf32>
    %c3 = arith.constant 3 : index
    %c0_18 = arith.constant 0 : index
    %c0_19 = arith.constant 0 : index
    %25 = vector.load %arg2[%c3, %c0_18, %c0_19] : memref<6x128x128xbf16, #tpu.memory_space<vmem>>, vector<1x128x128xbf16>
    %26 = vector.shape_cast %25 : vector<1x128x128xbf16> to vector<128x128xbf16>
    %c4 = arith.constant 4 : index
    %c0_20 = arith.constant 0 : index
    %c0_21 = arith.constant 0 : index
    %27 = vector.load %arg2[%c4, %c0_20, %c0_21] : memref<6x128x128xbf16, #tpu.memory_space<vmem>>, vector<1x128x128xbf16>
    %28 = vector.shape_cast %27 : vector<1x128x128xbf16> to vector<128x128xbf16>
    %c2_22 = arith.constant 2 : index
    %c0_23 = arith.constant 0 : index
    %c0_24 = arith.constant 0 : index
    %29 = vector.load %arg3[%c2_22, %c0_23, %c0_24] : memref<5x1x128xf32, #tpu.memory_space<vmem>>, vector<1x1x128xf32>
    %30 = vector.shape_cast %29 : vector<1x1x128xf32> to vector<1x128xf32>
    %c3_25 = arith.constant 3 : index
    %c0_26 = arith.constant 0 : index
    %c0_27 = arith.constant 0 : index
    %31 = vector.load %arg3[%c3_25, %c0_26, %c0_27] : memref<5x1x128xf32, #tpu.memory_space<vmem>>, vector<1x1x128xf32>
    %32 = vector.shape_cast %31 : vector<1x1x128xf32> to vector<1x128xf32>
    %33 = arith.truncf %24 : vector<128x128xf32> to vector<128x128xbf16>
    %cst_28 = arith.constant dense<0.000000e+00> : vector<128x128xf32>
    %34 = tpu.matmul %33, %26, %cst_28 {dimension_numbers = #tpu.dot_dimension_numbers<[1], [0], [0], [1], [0, 0, 1, 1], [], []>} : vector<128x128xbf16>, vector<128x128xbf16>, vector<128x128xf32> -> vector<128x128xf32>
    %35 = vector.broadcast %30 : vector<1x128xf32> to vector<128x128xf32>
    %36 = arith.addf %34, %35 : vector<128x128xf32>
    %cst_29 = arith.constant 0.000000e+00 : f32
    %37 = vector.broadcast %cst_29 : f32 to vector<128x128xf32>
    %38 = arith.maximumf %36, %37 : vector<128x128xf32>
    %39 = arith.truncf %38 : vector<128x128xf32> to vector<128x128xbf16>
    %cst_30 = arith.constant dense<0.000000e+00> : vector<128x128xf32>
    %40 = tpu.matmul %39, %28, %cst_30 {dimension_numbers = #tpu.dot_dimension_numbers<[1], [0], [0], [1], [0, 0, 1, 1], [], []>} : vector<128x128xbf16>, vector<128x128xbf16>, vector<128x128xf32> -> vector<128x128xf32>
    %41 = vector.broadcast %32 : vector<1x128xf32> to vector<128x128xf32>
    %42 = arith.addf %40, %41 : vector<128x128xf32>
    %43 = arith.addf %42, %24 : vector<128x128xf32>
    %cst_31 = arith.constant 0.000000e+00 : f32
    %44 = vector.broadcast %cst_31 : f32 to vector<128x128xf32>
    %45 = arith.maximumf %43, %44 : vector<128x128xf32>
    %c5 = arith.constant 5 : index
    %c0_32 = arith.constant 0 : index
    %c0_33 = arith.constant 0 : index
    %46 = vector.load %arg2[%c5, %c0_32, %c0_33] : memref<6x128x128xbf16, #tpu.memory_space<vmem>>, vector<1x128x128xbf16>
    %47 = vector.shape_cast %46 : vector<1x128x128xbf16> to vector<128x128xbf16>
    %c4_34 = arith.constant 4 : index
    %c0_35 = arith.constant 0 : index
    %c0_36 = arith.constant 0 : index
    %48 = vector.load %arg3[%c4_34, %c0_35, %c0_36] : memref<5x1x128xf32, #tpu.memory_space<vmem>>, vector<1x1x128xf32>
    %49 = vector.shape_cast %48 : vector<1x1x128xf32> to vector<1x128xf32>
    %50 = arith.truncf %45 : vector<128x128xf32> to vector<128x128xbf16>
    %cst_37 = arith.constant dense<0.000000e+00> : vector<128x128xf32>
    %51 = tpu.matmul %50, %47, %cst_37 {dimension_numbers = #tpu.dot_dimension_numbers<[1], [0], [0], [1], [0, 0, 1, 1], [], []>} : vector<128x128xbf16>, vector<128x128xbf16>, vector<128x128xf32> -> vector<128x128xf32>
    %52 = vector.broadcast %49 : vector<1x128xf32> to vector<128x128xf32>
    %53 = arith.addf %51, %52 : vector<128x128xf32>
    %54 = tpu.transpose %53, [1, 0] : vector<128x128xf32> -> vector<128x128xf32>
    %55 = vector.extract_strided_slice %54 {offsets = [0, 0], sizes = [1, 128], strides = [1, 1]} : vector<128x128xf32> to vector<1x128xf32>
    %56 = arith.negf %55 : vector<1x128xf32>
    %57 = math.exp %56 : vector<1x128xf32>
    %cst_38 = arith.constant 1.000000e+00 : f32
    %58 = vector.broadcast %cst_38 : f32 to vector<1x128xf32>
    %59 = arith.addf %58, %57 : vector<1x128xf32>
    %60 = arith.divf %58, %59 : vector<1x128xf32>
    %61 = vector.shape_cast %60 : vector<1x128xf32> to vector<1x1x128xf32>
    %c0_39 = arith.constant 0 : index
    %c0_40 = arith.constant 0 : index
    %c0_41 = arith.constant 0 : index
    %62 = vector.load %arg4[%c0_39, %c0_40, %c0_41] : memref<1x1x128xf32, #tpu.memory_space<vmem>>, vector<1x1x128xf32>
    tpu.vector_store %arg4[%c0_39, %c0_40, %c0_41], %61 {strides = array<i32>} : memref<1x1x128xf32, #tpu.memory_space<vmem>>, vector<1x1x128xf32>,
    return
  }
  func.func @transform_0(%arg0: i32) -> (i32, i32) {
    %c0_i32 = arith.constant 0 : i32
    %c0_i32_0 = arith.constant 0 : i32
    return %arg0, %c0_i32 : i32, i32
  }
  func.func @transform_1(%arg0: i32) -> (i32, i32, i32) {
    %c0_i32 = arith.constant 0 : i32
    %c0_i32_0 = arith.constant 0 : i32
    %c0_i32_1 = arith.constant 0 : i32
    %c0_i32_2 = arith.constant 0 : i32
    return %c0_i32, %c0_i32_0, %c0_i32_1 : i32, i32, i32
  }
  func.func @transform_2(%arg0: i32) -> (i32, i32, i32) {
    %c0_i32 = arith.constant 0 : i32
    %c0_i32_0 = arith.constant 0 : i32
    %c0_i32_1 = arith.constant 0 : i32
    %c0_i32_2 = arith.constant 0 : i32
    return %c0_i32, %c0_i32_0, %c0_i32_1 : i32, i32, i32
  }
  func.func @transform_3(%arg0: i32) -> (i32, i32, i32) {
    %c0_i32 = arith.constant 0 : i32
    %c0_i32_0 = arith.constant 0 : i32
    %c0_i32_1 = arith.constant 0 : i32
    return %arg0, %c0_i32, %c0_i32_0 : i32, i32, i32
  }
}

module attributes {stable_mosaic.version = 11 : i64} {
  func.func @kernel(%arg0: i32, %arg1: memref<128x64xbf16, #tpu.memory_space<vmem>>, %arg2: memref<6x128x128xbf16, #tpu.memory_space<vmem>>, %arg3: memref<5x1x128xf32, #tpu.memory_space<vmem>>, %arg4: memref<1x1x128xf32, #tpu.memory_space<vmem>>) attributes {dimension_semantics = [#tpu.dimension_semantics<parallel>], iteration_bounds = array<i64: 1>, scalar_prefetch = 0 : i64, scratch_operands = 0 : i64, tpu.core_type = #tpu.core_type<tc>, window_params = [{transform_indices = @transform_0, window_bounds = array<i64: 128, 64>}, {pipeline_mode = #tpu.pipeline_mode<synchronous>, transform_indices = @transform_1, window_bounds = array<i64: 6, 128, 128>}, {pipeline_mode = #tpu.pipeline_mode<synchronous>, transform_indices = @transform_2, window_bounds = array<i64: 5, 1, 128>}, {transform_indices = @transform_3, window_bounds = array<i64: 1, 1, 128>}]} {
    %c0 = arith.constant 0 : index
    %c0_0 = arith.constant 0 : index
    %0 = vector.load %arg1[%c0, %c0_0] : memref<128x64xbf16, #tpu.memory_space<vmem>>, vector<128x64xbf16>
    %c0_1 = arith.constant 0 : index
    %c0_2 = arith.constant 0 : index
    %c0_3 = arith.constant 0 : index
    %1 = vector.load %arg2[%c0_1, %c0_2, %c0_3] : memref<6x128x128xbf16, #tpu.memory_space<vmem>>, vector<1x64x128xbf16>
    %2 = vector.shape_cast %1 : vector<1x64x128xbf16> to vector<64x128xbf16>
    %cst = arith.constant dense<0.000000e+00> : vector<128x128xf32>
    %3 = tpu.matmul %0, %2, %cst {dimension_numbers = #tpu.dot_dimension_numbers<[1], [0], [0], [1], [0, 0, 1, 1], [], []>} : vector<128x64xbf16>, vector<64x128xbf16>, vector<128x128xf32> -> vector<128x128xf32>
    %c1 = arith.constant 1 : index
    %c0_4 = arith.constant 0 : index
    %c0_5 = arith.constant 0 : index
    %4 = vector.load %arg2[%c1, %c0_4, %c0_5] : memref<6x128x128xbf16, #tpu.memory_space<vmem>>, vector<1x128x128xbf16>
    %5 = vector.shape_cast %4 : vector<1x128x128xbf16> to vector<128x128xbf16>
    %c2 = arith.constant 2 : index
    %c0_6 = arith.constant 0 : index
    %c0_7 = arith.constant 0 : index
    %6 = vector.load %arg2[%c2, %c0_6, %c0_7] : memref<6x128x128xbf16, #tpu.memory_space<vmem>>, vector<1x128x128xbf16>
    %7 = vector.shape_cast %6 : vector<1x128x128xbf16> to vector<128x128xbf16>
    %c0_8 = arith.constant 0 : index
    %c0_9 = arith.constant 0 : index
    %c0_10 = arith.constant 0 : index
    %8 = vector.load %arg3[%c0_8, %c0_9, %c0_10] : memref<5x1x128xf32, #tpu.memory_space<vmem>>, vector<1x1x128xf32>
    %9 = vector.shape_cast %8 : vector<1x1x128xf32> to vector<1x128xf32>
    %c1_11 = arith.constant 1 : index
    %c0_12 = arith.constant 0 : index
    %c0_13 = arith.constant 0 : index
    %10 = vector.load %arg3[%c1_11, %c0_12, %c0_13] : memref<5x1x128xf32, #tpu.memory_space<vmem>>, vector<1x1x128xf32>
    %11 = vector.shape_cast %10 : vector<1x1x128xf32> to vector<1x128xf32>
    %12 = arith.truncf %3 : vector<128x128xf32> to vector<128x128xbf16>
    %cst_14 = arith.constant dense<0.000000e+00> : vector<128x128xf32>
    %13 = tpu.matmul %12, %5, %cst_14 {dimension_numbers = #tpu.dot_dimension_numbers<[1], [0], [0], [1], [0, 0, 1, 1], [], []>} : vector<128x128xbf16>, vector<128x128xbf16>, vector<128x128xf32> -> vector<128x128xf32>
    %14 = vector.broadcast %9 : vector<1x128xf32> to vector<128x128xf32>
    %15 = arith.addf %13, %14 : vector<128x128xf32>
    %cst_15 = arith.constant 0.000000e+00 : f32
    %16 = vector.broadcast %cst_15 : f32 to vector<128x128xf32>
    %17 = arith.maximumf %15, %16 : vector<128x128xf32>
    %18 = arith.truncf %17 : vector<128x128xf32> to vector<128x128xbf16>
    %cst_16 = arith.constant dense<0.000000e+00> : vector<128x128xf32>
    %19 = tpu.matmul %18, %7, %cst_16 {dimension_numbers = #tpu.dot_dimension_numbers<[1], [0], [0], [1], [0, 0, 1, 1], [], []>} : vector<128x128xbf16>, vector<128x128xbf16>, vector<128x128xf32> -> vector<128x128xf32>
    %20 = vector.broadcast %11 : vector<1x128xf32> to vector<128x128xf32>
    %21 = arith.addf %19, %20 : vector<128x128xf32>
    %22 = arith.addf %21, %3 : vector<128x128xf32>
    %cst_17 = arith.constant 0.000000e+00 : f32
    %23 = vector.broadcast %cst_17 : f32 to vector<128x128xf32>
    %24 = arith.maximumf %22, %23 : vector<128x128xf32>
    %c3 = arith.constant 3 : index
    %c0_18 = arith.constant 0 : index
    %c0_19 = arith.constant 0 : index
    %25 = vector.load %arg2[%c3, %c0_18, %c0_19] : memref<6x128x128xbf16, #tpu.memory_space<vmem>>, vector<1x128x128xbf16>
    %26 = vector.shape_cast %25 : vector<1x128x128xbf16> to vector<128x128xbf16>
    %c4 = arith.constant 4 : index
    %c0_20 = arith.constant 0 : index
    %c0_21 = arith.constant 0 : index
    %27 = vector.load %arg2[%c4, %c0_20, %c0_21] : memref<6x128x128xbf16, #tpu.memory_space<vmem>>, vector<1x128x128xbf16>
    %28 = vector.shape_cast %27 : vector<1x128x128xbf16> to vector<128x128xbf16>
    %c2_22 = arith.constant 2 : index
    %c0_23 = arith.constant 0 : index
    %c0_24 = arith.constant 0 : index
    %29 = vector.load %arg3[%c2_22, %c0_23, %c0_24] : memref<5x1x128xf32, #tpu.memory_space<vmem>>, vector<1x1x128xf32>
    %30 = vector.shape_cast %29 : vector<1x1x128xf32> to vector<1x128xf32>
    %c3_25 = arith.constant 3 : index
    %c0_26 = arith.constant 0 : index
    %c0_27 = arith.constant 0 : index
    %31 = vector.load %arg3[%c3_25, %c0_26, %c0_27] : memref<5x1x128xf32, #tpu.memory_space<vmem>>, vector<1x1x128xf32>
    %32 = vector.shape_cast %31 : vector<1x1x128xf32> to vector<1x128xf32>
    %33 = arith.truncf %24 : vector<128x128xf32> to vector<128x128xbf16>
    %cst_28 = arith.constant dense<0.000000e+00> : vector<128x128xf32>
    %34 = tpu.matmul %33, %26, %cst_28 {dimension_numbers = #tpu.dot_dimension_numbers<[1], [0], [0], [1], [0, 0, 1, 1], [], []>} : vector<128x128xbf16>, vector<128x128xbf16>, vector<128x128xf32> -> vector<128x128xf32>
    %35 = vector.broadcast %30 : vector<1x128xf32> to vector<128x128xf32>
    %36 = arith.addf %34, %35 : vector<128x128xf32>
    %cst_29 = arith.constant 0.000000e+00 : f32
    %37 = vector.broadcast %cst_29 : f32 to vector<128x128xf32>
    %38 = arith.maximumf %36, %37 : vector<128x128xf32>
    %39 = arith.truncf %38 : vector<128x128xf32> to vector<128x128xbf16>
    %cst_30 = arith.constant dense<0.000000e+00> : vector<128x128xf32>
    %40 = tpu.matmul %39, %28, %cst_30 {dimension_numbers = #tpu.dot_dimension_numbers<[1], [0], [0], [1], [0, 0, 1, 1], [], []>} : vector<128x128xbf16>, vector<128x128xbf16>, vector<128x128xf32> -> vector<128x128xf32>
    %41 = vector.broadcast %32 : vector<1x128xf32> to vector<128x128xf32>
    %42 = arith.addf %40, %41 : vector<128x128xf32>
    %43 = arith.addf %42, %24 : vector<128x128xf32>
    %cst_31 = arith.constant 0.000000e+00 : f32
    %44 = vector.broadcast %cst_31 : f32 to vector<128x128xf32>
    %45 = arith.maximumf %43, %44 : vector<128x128xf32>
    %c5 = arith.constant 5 : index
    %c0_32 = arith.constant 0 : index
    %c0_33 = arith.constant 0 : index
    %46 = vector.load %arg2[%c5, %c0_32, %c0_33] : memref<6x128x128xbf16, #tpu.memory_space<vmem>>, vector<1x128x128xbf16>
    %47 = vector.shape_cast %46 : vector<1x128x128xbf16> to vector<128x128xbf16>
    %c4_34 = arith.constant 4 : index
    %c0_35 = arith.constant 0 : index
    %c0_36 = arith.constant 0 : index
    %48 = vector.load %arg3[%c4_34, %c0_35, %c0_36] : memref<5x1x128xf32, #tpu.memory_space<vmem>>, vector<1x1x128xf32>
    %49 = vector.shape_cast %48 : vector<1x1x128xf32> to vector<1x128xf32>
    %50 = arith.truncf %45 : vector<128x128xf32> to vector<128x128xbf16>
    %cst_37 = arith.constant dense<0.000000e+00> : vector<128x128xf32>
    %51 = tpu.matmul %50, %47, %cst_37 {dimension_numbers = #tpu.dot_dimension_numbers<[1], [0], [0], [1], [0, 0, 1, 1], [], []>} : vector<128x128xbf16>, vector<128x128xbf16>, vector<128x128xf32> -> vector<128x128xf32>
    %52 = vector.broadcast %49 : vector<1x128xf32> to vector<128x128xf32>
    %53 = arith.addf %51, %52 : vector<128x128xf32>
    %54 = tpu.transpose %53, [1, 0] : vector<128x128xf32> -> vector<128x128xf32>
    %55 = vector.extract_strided_slice %54 {offsets = [0, 0], sizes = [1, 128], strides = [1, 1]} : vector<128x128xf32> to vector<1x128xf32>
    %56 = arith.negf %55 : vector<1x128xf32>
    %57 = math.exp %56 : vector<1x128xf32>
    %cst_38 = arith.constant 1.000000e+00 : f32
    %58 = vector.broadcast %cst_38 : f32 to vector<1x128xf32>
    %59 = arith.addf %58, %57 : vector<1x128xf32>
    %60 = arith.divf %58, %59 : vector<1x128xf32>
    %61 = vector.shape_cast %60 : vector<1x128xf32> to vector<1x1x128xf32>
    %c0_39 = arith.constant 0 : index
    %c0_40 = arith.constant 0 : index
    %c0_41 = arith.constant 0 : index
    %62 = vector.load %arg4[%c0_39, %c0_40, %c0_41] : memref<1x1x128xf32, #tpu.memory_space<vmem>>, vector<1x1x128xf32>
    tpu.vector_store %arg4[%c0_39, %c0_40, %c0_41], %61 {strides = array<i32>} : memref<1x1x128xf32, #tpu.memory_space<vmem>>, vector<1x1x128xf32>,
    return
  }
  func.func @transform_0(%arg0: i32) -> (i32, i32) {
    %c0_i32 = arith.constant 0 : i32
    %c0_i32_0 = arith.constant 0 : i32
    return %arg0, %c0_i32 : i32, i32
  }
  func.func @transform_1(%arg0: i32) -> (i32, i32, i32) {
    %c0_i32 = arith.constant 0 : i32
    %c0_i32_0 = arith.constant 0 : i32
    %c0_i32_1 = arith.constant 0 : i32
    %c0_i32_2 = arith.constant 0 : i32
    return %c0_i32, %c0_i32_0, %c0_i32_1 : i32, i32, i32
  }
  func.func @transform_2(%arg0: i32) -> (i32, i32, i32) {
    %c0_i32 = arith.constant 0 : i32
    %c0_i32_0 = arith.constant 0 : i32
    %c0_i32_1 = arith.constant 0 : i32
    %c0_i32_2 = arith.constant 0 : i32
    return %c0_i32, %c0_i32_0, %c0_i32_1 : i32, i32, i32
  }
  func.func @transform_3(%arg0: i32) -> (i32, i32, i32) {
    %c0_i32 = arith.constant 0 : i32
    %c0_i32_0 = arith.constant 0 : i32
    %c0_i32_1 = arith.constant 0 : i32
    return %arg0, %c0_i32, %c0_i32_0 : i32, i32, i32
  }
}

</mosaic_0001>

<bundles_post_ra>
// kernel: tpu_custom_call.1
= control target key start
LH: loop header
LB: loop body
LE: loop exit
PB: predicated region body
PF: predicated region fallthrough
CT: control target
= control target key end

     0   :  { %8 = vsyncpa [#allocation3], 0  ;;  %s2080_s0 = inlined_call_operand.vmem [shape: bf16[128,64], index: 0, kind: input, shape index: {}]   ;;  %s2081_s1 = inlined_call_operand.hbm [shape: bf16[6,128,128], index: 1, kind: input, shape index: {}]   ;;  %s2082_s2 = inlined_call_operand.vmem [shape: f32[5,1,128], index: 2, kind: input, shape index: {}]   ;;  %s2083_s3 = inlined_call_operand.hbm [shape: f32[1,1,128], index: 3, kind: output, shape index: {}]  }
   0x1   :  { %9 = vsyncpa [#allocation4], 0  ;;  %s1749_s12 = smov [#allocation2]   ;;  %s1701_s16 = scalar_lea.hbm %s2081_s1, 6144 }
   0x2   :  { %s17_s13 = sshll.u32 %s1749_s12, 4  ;;  %p1702_p0 = scmp.ne.s32.totalorder %s2081_s1, %s1701_s16  ;;  %s18_s13 = int_to_ptr.vmem [resolvable:$true] %s17_s13 }
   0x3   :  { %p1705_p1 = scmp.lt.u32.totalorder %s1701_s16, %s2081_s1 }
   0x5   :  { %p1707_p2 = pnand %p1705_p1, %p1702_p0 }
   0x7   :  { %1710 = shalt.err (!%p1707_p2)
}
   0x8   :  { %s1711_s21 = scalar_lea.vmem %s18_s13, 6144  ;;  %p1716_p4 = scmp.lt.s32.totalorder %s18_s13, %s18_s13 }
   0x9   :  { %p1712_p3 = scmp.ne.s32.totalorder %s18_s13, %s1711_s21  ;;  %p1717_p5 = scmp.lt.s32.totalorder %s1711_s21, %s1711_s21 }
   0xb   :  { %p1718_p6 = por %p1717_p5, %p1716_p4 }
   0xd   :  { %p1719_p7 = pnand %p1718_p6, %p1712_p3 }
   0xf   :  { %1722 = shalt.err (!%p1719_p7)
}
  0x10   :  { %s1750_s22 = smov 64   ;;  %s1751_s23 = smov 4  }
  0x11   :  { %23 = dma.hbm_to_vmem [thread:$0]  %s2081_s1, 6144, %s18_s13, [#allocation3], %s1750_s22, %s1750_s22, %s1751_s23  }
  0x12   :  { %1745 = dma.done.wait [#allocation3], 6144  }
  0x13   :  { %1746 = vsyncadd [#allocation3], 4294961152  ;;  %v1645_v0 = vld [vmem:[#allocation2] sm:$0xff]   ;;  %v1646_v1 = vld [vmem:[#allocation2 + $0x8] sm:$0xff]   ;;  %vm118_vm0 = vcmask 523264  }
  0x14   :  { %1441 = vmatprep.subr.bf16.mxu0 %v1645_v0  ;;  %v1647_v2 = vld [vmem:[#allocation2 + $0x10] sm:$0xff]   ;;  %v1649_v3 = vld [vmem:[%s2080_s0] sm:$0xff]   ;;  %v1648_v4 = vld [vmem:[#allocation2 + $0x18] sm:$0xff]  }
  0x15   :  { %1442 = vmatpush3.bf16.msra.mxu0 %v1645_v0  ;;  %1449 = vmatprep.mubr.msk.bf16.mxu0 %vm118_vm0, %v1649_v3  ;;  %v1657_v5 = vld [vmem:[#allocation2 + $0x40] sm:$0xff]   ;;  %v1658_v6 = vld [vmem:[#allocation2 + $0x48] sm:$0xff]   ;;  %v1651_v8 = vld [vmem:[%s2080_s0 + $0x10] sm:$0xff]  }
  0x16   :  { %1443 = vmatprep.subr.bf16.mxu0 %v1646_v1  ;;  %v1650_v7 = vld [vmem:[%s2080_s0 + $0x8] sm:$0xff]   ;;  %1465 = vmatprep.subr.bf16.mxu1 %v1657_v5  ;;  %v1659_v9 = vld [vmem:[#allocation2 + $0x50] sm:$0xff]   ;;  %v1660_v10 = vld [vmem:[#allocation2 + $0x58] sm:$0xff]  }
  0x17   :  { %1466 = vmatpush3.bf16.msra.mxu1 %v1657_v5  ;;  %v1652_v11 = vld [vmem:[%s2080_s0 + $0x18] sm:$0xff]   ;;  %v1653_v12 = vld [vmem:[%s2080_s0 + $0x20] sm:$0xff]   ;;  %v1662_v14 = vld [vmem:[#allocation2 + $0x68] sm:$0xff]  }
  0x18   :  { %1467 = vmatprep.subr.bf16.mxu1 %v1658_v6  ;;  %v1661_v13 = vld [vmem:[#allocation2 + $0x60] sm:$0xff]   ;;  %v1654_v15 = vld [vmem:[%s2080_s0 + $0x28] sm:$0xff]   ;;  %v1655_v16 = vld [vmem:[%s2080_s0 + $0x30] sm:$0xff]  }
  0x19   :  { %1444 = vmatpush3.bf16.msra.mxu0 %v1646_v1  ;;  %v1663_v17 = vld [vmem:[#allocation2 + $0x70] sm:$0xff]   ;;  %v1656_v18 = vld [vmem:[%s2080_s0 + $0x38] sm:$0xff]   ;;  %v1665_v20 = vld [vmem:[#allocation2 + $0x80] sm:$0xff]  }
  0x1a   :  { %1445 = vmatprep.subr.bf16.mxu0 %v1647_v2  ;;  %v1664_v19 = vld [vmem:[#allocation2 + $0x78] sm:$0xff]   ;;  %v1666_v21 = vld [vmem:[#allocation2 + $0x88] sm:$0xff]   ;;  %v1667_v22 = vld [vmem:[#allocation2 + $0x90] sm:$0xff]  }
  0x1b   :  { %1468 = vmatpush3.bf16.msra.mxu1 %v1658_v6  ;;  %v1668_v23 = vld [vmem:[#allocation2 + $0x98] sm:$0xff]   ;;  %v1669_v24 = vld [vmem:[#allocation2 + $0xa0] sm:$0xff]   ;;  %v1670_v25 = vld [vmem:[#allocation2 + $0xa8] sm:$0xff]  }
  0x1c   :  { %1469 = vmatprep.subr.bf16.mxu1 %v1659_v9  ;;  %v1671_v50 = vld [vmem:[#allocation2 + $0xb0] sm:$0xff]   ;;  %v1672_v51 = vld [vmem:[#allocation2 + $0xb8] sm:$0xff]   ;;  %v1673_v52 = vld [vmem:[#allocation2 + $0xc0] sm:$0xff]  }
  0x1d   :  { %1446 = vmatpush3.bf16.msra.mxu0 %v1647_v2  ;;  %v1674_v53 = vld [vmem:[#allocation2 + $0xc8] sm:$0xff]   ;;  %v1675_v54 = vld [vmem:[#allocation2 + $0xd0] sm:$0xff]   ;;  %v1676_v55 = vld [vmem:[#allocation2 + $0xd8] sm:$0xff]  }
  0x1e   :  { %1447 = vmatprep.subr.bf16.mxu0 %v1648_v4  ;;  %v1677_v56 = vld [vmem:[#allocation2 + $0xe0] sm:$0xff]  }
  0x1f   :  { %1470 = vmatpush3.bf16.msra.mxu1 %v1659_v9  ;;  %v1300_v57 = vld [vmem:[%s2082_s2] ss:$0 sm:$0xff] }
  0x20   :  { %1471 = vmatprep.subr.bf16.mxu1 %v1660_v10 }
  0x21   :  { %1448 = vmatpush3.bf16.msra.mxu0 %v1648_v4 }
  0x22   :  { %1497 = vmatprep.subr.bf16.mxu0 %v1665_v20 }
  0x23   :  { %1472 = vmatpush3.bf16.msra.mxu1 %v1660_v10 }
  0x24   :  { %1450 = vmatmul.mubr.msk.bf16.vlgmr.msra.gmra.mrb[0].mxu0 %vm118_vm0, %v1650_v7  ;;  %1473 = vmatprep.subr.bf16.mxu1 %v1661_v13 }
  0x25   :  { %1453 = vmatprep.mubr.msk.bf16.mxu0 %vm118_vm0, %v1651_v8  ;;  %1498 = vmatpush3.bf16.msra.mxu0 %v1665_v20 }
  0x26   :  { %1499 = vmatprep.subr.bf16.mxu0 %v1666_v21 }
  0x27   :  { %1474 = vmatpush3.bf16.msra.mxu1 %v1661_v13 }
  0x28   :  { %1475 = vmatprep.subr.bf16.mxu1 %v1662_v14 }
  0x29   :  { %1500 = vmatpush3.bf16.msra.mxu0 %v1666_v21 }
  0x2a   :  { %1501 = vmatprep.subr.bf16.mxu0 %v1667_v22 }
  0x2b   :  { %1476 = vmatpush3.bf16.msra.mxu1 %v1662_v14 }
  0x2c   :  { %1454 = vmatmul.mubr.msk.bf16.gmra.mrb[4].mxu0 %vm118_vm0, %v1652_v11  ;;  %1477 = vmatprep.subr.bf16.mxu1 %v1663_v17 }
  0x2d   :  { %1457 = vmatprep.mubr.msk.bf16.mxu0 %vm118_vm0, %v1653_v12  ;;  %1502 = vmatpush3.bf16.msra.mxu0 %v1667_v22 }
  0x2e   :  { %1503 = vmatprep.subr.bf16.mxu0 %v1668_v23 }
  0x2f   :  { %1478 = vmatpush3.bf16.msra.mxu1 %v1663_v17 }
  0x30   :  { %1479 = vmatprep.subr.bf16.mxu1 %v1664_v19 }
  0x31   :  { %1504 = vmatpush3.bf16.msra.mxu0 %v1668_v23 }
  0x32   :  { %1505 = vmatprep.subr.bf16.mxu0 %v1669_v24 }
  0x33   :  { %1480 = vmatpush3.bf16.msra.mxu1 %v1664_v19 }
  0x34   :  { %1458 = vmatmul.mubr.msk.bf16.gmra.mrb[8].mxu0 %vm118_vm0, %v1654_v15  ;;  %1529 = vmatprep.subr.bf16.mxu1 %v1673_v52 }
  0x35   :  { %1461 = vmatprep.mubr.msk.bf16.mxu0 %vm118_vm0, %v1655_v16  ;;  %1506 = vmatpush3.bf16.msra.mxu0 %v1669_v24 }
  0x36   :  { %1507 = vmatprep.subr.bf16.mxu0 %v1670_v25 }
  0x39   :  { %1508 = vmatpush3.bf16.msra.mxu0 %v1670_v25 }
  0x3a   :  { %1509 = vmatprep.subr.bf16.mxu0 %v1671_v50 }
  0x3c   :  { %1462 = vmatmul.mubr.msk.bf16.gmra.mrb[12].mxu0 %vm118_vm0, %v1656_v18 }
  0x3d   :  { %1510 = vmatpush3.bf16.msra.mxu0 %v1671_v50 }
  0x3e   :  { %1511 = vmatprep.subr.bf16.mxu0 %v1672_v51 }
  0x41   :  { %1512 = vmatpush3.bf16.msra.mxu0 %v1672_v51 }
  0xf7   :  { %v1817_v26 = vpop.f32.mrb[0].mxu0 }
  0xf8   :  { %v1819_v27 = vpop.f32.mrb[1].mxu0 }
  0xf9   :  { %v1821_v28 = vpop.f32.mrb[2].mxu0 }
  0xfa   :  { %v278_v29 = vpack.c.bf16 %v1821_v28, %v1817_v26  ;;  %v1825_v30 = vpop.f32.mrb[3].mxu0 }
  0xfb   :  { %v277_v31 = vpack.c.bf16 %v1825_v30, %v1819_v27 }
  0xfd   :  { %1481 = vmatprep.mubr.bf16.mxu1 %v277_v31 }
  0xfe   :  { %1482 = vmatmul.mubr.bf16.vlgmr.msra.gmra.mrb[0].mxu1 %v278_v29 }
  0xff   :  { %v1829_v32 = vpop.f32.mrb[4].mxu0  ;;  %1530 = vmatpush3.bf16.msra.mxu1 %v1673_v52 }
 0x100   :  { %v1831_v33 = vpop.f32.mrb[5].mxu0  ;;  %1531 = vmatprep.subr.bf16.mxu1 %v1674_v53 }
 0x101   :  { %v1833_v34 = vpop.f32.mrb[6].mxu0 }
 0x102   :  { %v280_v35 = vpack.c.bf16 %v1833_v34, %v1829_v32  ;;  %v1837_v36 = vpop.f32.mrb[7].mxu0 }
 0x103   :  { %v279_v37 = vpack.c.bf16 %v1837_v36, %v1831_v33  ;;  %1532 = vmatpush3.bf16.msra.mxu1 %v1674_v53 }
 0x104   :  { %1533 = vmatprep.subr.bf16.mxu1 %v1675_v54 }
 0x105   :  { %1485 = vmatprep.mubr.bf16.mxu1 %v279_v37 }
 0x106   :  { %1486 = vmatmul.mubr.bf16.gmra.mrb[4].mxu1 %v280_v35 }
 0x107   :  { %v1841_v38 = vpop.f32.mrb[8].mxu0  ;;  %1534 = vmatpush3.bf16.msra.mxu1 %v1675_v54 }
 0x108   :  { %v1843_v39 = vpop.f32.mrb[9].mxu0  ;;  %1535 = vmatprep.subr.bf16.mxu1 %v1676_v55 }
 0x109   :  { %v1845_v40 = vpop.f32.mrb[10].mxu0 }
 0x10a   :  { %v282_v41 = vpack.c.bf16 %v1845_v40, %v1841_v38  ;;  %v1849_v42 = vpop.f32.mrb[11].mxu0 }
 0x10b   :  { %v281_v43 = vpack.c.bf16 %v1849_v42, %v1843_v39  ;;  %1536 = vmatpush3.bf16.msra.mxu1 %v1676_v55 }
 0x10c   :  { %1537 = vmatprep.subr.bf16.mxu1 %v1677_v56 }
 0x10d   :  { %1489 = vmatprep.mubr.bf16.mxu1 %v281_v43 }
 0x10e   :  { %1490 = vmatmul.mubr.bf16.gmra.mrb[8].mxu1 %v282_v41 }
 0x10f   :  { %v1853_v44 = vpop.f32.mrb[12].mxu0  ;;  %1538 = vmatpush3.bf16.msra.mxu1 %v1677_v56 }
 0x110   :  { %v1855_v45 = vpop.f32.mrb[13].mxu0 }
 0x111   :  { %v1857_v46 = vpop.f32.mrb[14].mxu0 }
 0x112   :  { %v284_v47 = vpack.c.bf16 %v1857_v46, %v1853_v44  ;;  %v1861_v48 = vpop.f32.mrb[15].mxu0 }
 0x113   :  { %v283_v49 = vpack.c.bf16 %v1861_v48, %v1855_v45 }
 0x115   :  { %1493 = vmatprep.mubr.bf16.mxu1 %v283_v49 }
 0x116   :  { %1494 = vmatmul.mubr.bf16.gmra.mrb[12].mxu1 %v284_v47 }
 0x1d1   :  { %v1483_v58 = vpop.f32.mrb[0].mxu1 }
 0x1d2   :  { %v382_v59 = vadd.f32 %v1483_v58, %v1300_v57  ;;  %v373_v60 = vpop.f32.mrb[1].mxu1 }
 0x1d3   :  { %v374_v61 = vadd.f32 %v1300_v57, %v373_v60  ;;  %v1484_v62 = vpop.f32.mrb[2].mxu1 }
 0x1d4   :  { %v385_v63 = vadd.f32 %v1484_v62, %v1300_v57  ;;  %v376_v0 = vpop.f32.mrb[3].mxu1  ;;  %v438_v2 = vmax.f32 %v382_v59, 0.0 }
 0x1d5   :  { %v377_v1 = vadd.f32 %v1300_v57, %v376_v0  ;;  %v436_v4 = vmax.f32 %v374_v61, 0.0 }
 0x1d6   :  { %v439_v3 = vmax.f32 %v385_v63, 0.0 }
 0x1d7   :  { %v437_v5 = vmax.f32 %v377_v1, 0.0 }
 0x1d8   :  { %v453_v6 = vpack.c.bf16 %v439_v3, %v438_v2  ;;  %v1678_v3 = vld [vmem:[#allocation2 + $0xe8] sm:$0xff]  }
 0x1d9   :  { %v452_v7 = vpack.c.bf16 %v437_v5, %v436_v4  ;;  %v1487_v8 = vpop.f32.mrb[4].mxu1  ;;  %1539 = vmatprep.subr.bf16.mxu1 %v1678_v3  ;;  %v1679_v4 = vld [vmem:[#allocation2 + $0xf0] sm:$0xff]   ;;  %v1680_v5 = vld [vmem:[#allocation2 + $0xf8] sm:$0xff]  }
 0x1da   :  { %v398_v9 = vadd.f32 %v1487_v8, %v1300_v57  ;;  %v389_v10 = vpop.f32.mrb[5].mxu1  ;;  %1540 = vmatpush3.bf16.msra.mxu1 %v1678_v3  ;;  %v1684_v8 = vld [vmem:[#allocation2 + $0x118] sm:$0xff]  }
 0x1db   :  { %v390_v11 = vadd.f32 %v1300_v57, %v389_v10  ;;  %v1488_v12 = vpop.f32.mrb[6].mxu1  ;;  %1513 = vmatprep.mubr.bf16.mxu0 %v452_v7  ;;  %1541 = vmatprep.subr.bf16.mxu1 %v1679_v4  ;;  %v1682_v7 = vld [vmem:[#allocation2 + $0x108] sm:$0xff]  }
 0x1dc   :  { %v442_v13 = vmax.f32 %v398_v9, 0.0  ;;  %v401_v14 = vadd.f32 %v1488_v12, %v1300_v57  ;;  %v392_v15 = vpop.f32.mrb[7].mxu1  ;;  %1514 = vmatmul.mubr.bf16.vlgmr.msra.gmra.mrb[16].mxu0 %v453_v6  ;;  %v1681_v6 = vld [vmem:[#allocation2 + $0x100] sm:$0xff]   ;;  %v1686_v10 = vld [vmem:[#allocation2 + $0x128] sm:$0xff]  }
 0x1dd   :  { %v440_v16 = vmax.f32 %v390_v11, 0.0  ;;  %v393_v17 = vadd.f32 %v1300_v57, %v392_v15  ;;  %1561 = vmatprep.subr.bf16.mxu0 %v1681_v6  ;;  %v1685_v9 = vld [vmem:[#allocation2 + $0x120] sm:$0xff]  }
 0x1de   :  { %v443_v18 = vmax.f32 %v401_v14, 0.0  ;;  %1542 = vmatpush3.bf16.msra.mxu1 %v1679_v4  ;;  %1562 = vmatpush3.bf16.msra.mxu0 %v1681_v6  ;;  %v1871_v11 = vld [vmem:[%s2082_s2 + $0x1] ss:$0 sm:$0xff] }
 0x1df   :  { %v441_v19 = vmax.f32 %v393_v17, 0.0  ;;  %1543 = vmatprep.subr.bf16.mxu1 %v1680_v5  ;;  %1563 = vmatprep.subr.bf16.mxu0 %v1682_v7 }
 0x1e0   :  { %v455_v20 = vpack.c.bf16 %v443_v18, %v442_v13 }
 0x1e1   :  { %v454_v21 = vpack.c.bf16 %v441_v19, %v440_v16  ;;  %v1491_v22 = vpop.f32.mrb[8].mxu1 }
 0x1e2   :  { %v414_v23 = vadd.f32 %v1491_v22, %v1300_v57  ;;  %v405_v24 = vpop.f32.mrb[9].mxu1  ;;  %1544 = vmatpush3.bf16.msra.mxu1 %v1680_v5  ;;  %1564 = vmatpush3.bf16.msra.mxu0 %v1682_v7 }
 0x1e3   :  { %v406_v25 = vadd.f32 %v1300_v57, %v405_v24  ;;  %v1492_v29 = vpop.f32.mrb[10].mxu1  ;;  %1517 = vmatprep.mubr.bf16.mxu0 %v454_v21 }
 0x1e4   :  { %v446_v31 = vmax.f32 %v414_v23, 0.0  ;;  %v417_v35 = vadd.f32 %v1492_v29, %v1300_v57  ;;  %v408_v37 = vpop.f32.mrb[11].mxu1  ;;  %1518 = vmatmul.mubr.bf16.gmra.mrb[20].mxu0 %v455_v20 }
 0x1e5   :  { %v444_v41 = vmax.f32 %v406_v25, 0.0  ;;  %v409_v43 = vadd.f32 %v1300_v57, %v408_v37 }
 0x1e6   :  { %v447_v47 = vmax.f32 %v417_v35, 0.0 }
 0x1e7   :  { %v445_v49 = vmax.f32 %v409_v43, 0.0 }
 0x1e8   :  { %v457_v50 = vpack.c.bf16 %v447_v47, %v446_v31 }
 0x1e9   :  { %v456_v51 = vpack.c.bf16 %v445_v49, %v444_v41  ;;  %v1495_v52 = vpop.f32.mrb[12].mxu1 }
 0x1ea   :  { %v430_v53 = vadd.f32 %v1495_v52, %v1300_v57  ;;  %v421_v54 = vpop.f32.mrb[13].mxu1 }
 0x1eb   :  { %v422_v55 = vadd.f32 %v1300_v57, %v421_v54  ;;  %v1496_v56 = vpop.f32.mrb[14].mxu1  ;;  %1521 = vmatprep.mubr.bf16.mxu0 %v456_v51 }
 0x1ec   :  { %v450_v58 = vmax.f32 %v430_v53, 0.0  ;;  %v433_v59 = vadd.f32 %v1496_v56, %v1300_v57  ;;  %v424_v60 = vpop.f32.mrb[15].mxu1  ;;  %1522 = vmatmul.mubr.bf16.gmra.mrb[24].mxu0 %v457_v50 }
 0x1ed   :  { %v448_v61 = vmax.f32 %v422_v55, 0.0  ;;  %v425_v62 = vadd.f32 %v1300_v57, %v424_v60  ;;  %v1683_v57 = vld [vmem:[#allocation2 + $0x110] sm:$0xff]  }
 0x1ee   :  { %v451_v63 = vmax.f32 %v433_v59, 0.0  ;;  %1565 = vmatprep.subr.bf16.mxu0 %v1683_v57 }
 0x1ef   :  { %v449_v0 = vmax.f32 %v425_v62, 0.0  ;;  %1566 = vmatpush3.bf16.msra.mxu0 %v1683_v57 }
 0x1f0   :  { %v459_v1 = vpack.c.bf16 %v451_v63, %v450_v58  ;;  %1567 = vmatprep.subr.bf16.mxu0 %v1684_v8 }
 0x1f1   :  { %v458_v2 = vpack.c.bf16 %v449_v0, %v448_v61 }
 0x1f3   :  { %1525 = vmatprep.mubr.bf16.mxu0 %v458_v2  ;;  %1568 = vmatpush3.bf16.msra.mxu0 %v1684_v8 }
 0x1f4   :  { %1526 = vmatmul.mubr.bf16.gmra.mrb[28].mxu0 %v459_v1  ;;  %1569 = vmatprep.subr.bf16.mxu0 %v1685_v9 }
 0x1f7   :  { %1570 = vmatpush3.bf16.msra.mxu0 %v1685_v9 }
 0x1f8   :  { %1571 = vmatprep.subr.bf16.mxu0 %v1686_v10 }
 0x1fb   :  { %1572 = vmatpush3.bf16.msra.mxu0 %v1686_v10 }
 0x2af   :  { %v1515_v12 = vpop.f32.mrb[16].mxu0 }
 0x2b0   :  { %v557_v13 = vadd.f32 %v1515_v12, %v1871_v11  ;;  %v548_v14 = vpop.f32.mrb[17].mxu0 }
 0x2b1   :  { %v549_v15 = vadd.f32 %v1871_v11, %v548_v14  ;;  %v1516_v16 = vpop.f32.mrb[18].mxu0 }
 0x2b2   :  { %v1876_v17 = vadd.f32 %v1817_v26, %v557_v13  ;;  %v560_v18 = vadd.f32 %v1516_v16, %v1871_v11  ;;  %v551_v19 = vpop.f32.mrb[19].mxu0 }
 0x2b3   :  { %v1880_v20 = vadd.f32 %v549_v15, %v1819_v27  ;;  %v552_v21 = vadd.f32 %v1871_v11, %v551_v19 }
 0x2b4   :  { %v1884_v22 = vadd.f32 %v1821_v28, %v560_v18  ;;  %v629_v31 = vmax.f32 %v1876_v17, 0.0 }
 0x2b5   :  { %v1887_v23 = vadd.f32 %v552_v21, %v1825_v30  ;;  %v627_v25 = vmax.f32 %v1880_v20, 0.0 }
 0x2b6   :  { %v630_v24 = vmax.f32 %v1884_v22, 0.0 }
 0x2b7   :  { %v628_v26 = vmax.f32 %v1887_v23, 0.0  ;;  %v1519_v29 = vpop.f32.mrb[20].mxu0 }
 0x2b8   :  { %v573_v27 = vadd.f32 %v1519_v29, %v1871_v11  ;;  %v564_v35 = vpop.f32.mrb[21].mxu0  ;;  %v682_v30 = vpack.c.bf16 %v630_v24, %v629_v31 }
 0x2b9   :  { %v565_v37 = vadd.f32 %v1871_v11, %v564_v35  ;;  %v1520_v41 = vpop.f32.mrb[22].mxu0  ;;  %v681_v28 = vpack.c.bf16 %v628_v26, %v627_v25  ;;  %v1689_v35 = vld [vmem:[#allocation2 + $0x140] sm:$0xff]  }
 0x2ba   :  { %v1904_v43 = vadd.f32 %v1829_v32, %v573_v27  ;;  %v576_v47 = vadd.f32 %v1520_v41, %v1871_v11  ;;  %v567_v49 = vpop.f32.mrb[23].mxu0  ;;  %1625 = vmatprep.subr.bf16.mxu1 %v1689_v35  ;;  %v1691_v41 = vld [vmem:[#allocation2 + $0x150] sm:$0xff]  }
 0x2bb   :  { %v1908_v50 = vadd.f32 %v565_v37, %v1831_v33  ;;  %v568_v51 = vadd.f32 %v1871_v11, %v567_v49  ;;  %1545 = vmatprep.mubr.bf16.mxu1 %v681_v28  ;;  %v1690_v37 = vld [vmem:[#allocation2 + $0x148] sm:$0xff]   ;;  %v1692_v28 = vld [vmem:[#allocation2 + $0x158] sm:$0xff]  }
 0x2bc   :  { %v1912_v52 = vadd.f32 %v1833_v34, %v576_v47  ;;  %1546 = vmatmul.mubr.bf16.vlgmr.msra.gmra.mrb[16].mxu1 %v682_v30  ;;  %v633_v33 = vmax.f32 %v1904_v43, 0.0  ;;  %v1985_v30 = vld [vmem:[#allocation2 + $0x160] sm:$0xff]  }
 0x2bd   :  { %v1915_v53 = vadd.f32 %v568_v51, %v1837_v36  ;;  %v631_v32 = vmax.f32 %v1908_v50, 0.0  ;;  %1633 = vmatpush3.bf16.msra.mxu1 %v1689_v35  ;;  %v1992_v47 = vld [vmem:[%s2082_s2 + $0x2] ss:$0 sm:$0xff] }
 0x2be   :  { %v634_v54 = vmax.f32 %v1912_v52, 0.0  ;;  %1626 = vmatprep.subr.bf16.mxu1 %v1690_v37 }
 0x2bf   :  { %v632_v55 = vmax.f32 %v1915_v53, 0.0  ;;  %v1523_v56 = vpop.f32.mrb[24].mxu0 }
 0x2c0   :  { %v589_v58 = vadd.f32 %v1523_v56, %v1871_v11  ;;  %v580_v59 = vpop.f32.mrb[25].mxu0  ;;  %v684_v0 = vpack.c.bf16 %v634_v54, %v633_v33 }
 0x2c1   :  { %v581_v60 = vadd.f32 %v1871_v11, %v580_v59  ;;  %v1524_v34 = vpop.f32.mrb[26].mxu0  ;;  %v683_v36 = vpack.c.bf16 %v632_v55, %v631_v32  ;;  %1634 = vmatpush3.bf16.msra.mxu1 %v1690_v37 }
 0x2c2   :  { %v1928_v61 = vadd.f32 %v1841_v38, %v589_v58  ;;  %v592_v62 = vadd.f32 %v1524_v34, %v1871_v11  ;;  %v583_v63 = vpop.f32.mrb[27].mxu0  ;;  %1627 = vmatprep.subr.bf16.mxu1 %v1691_v41 }
 0x2c3   :  { %v1936_v1 = vadd.f32 %v581_v60, %v1843_v39  ;;  %v584_v2 = vadd.f32 %v1871_v11, %v583_v63  ;;  %1549 = vmatprep.mubr.bf16.mxu1 %v683_v36 }
 0x2c4   :  { %v1940_v3 = vadd.f32 %v1845_v40, %v592_v62  ;;  %1550 = vmatmul.mubr.bf16.gmra.mrb[20].mxu1 %v684_v0  ;;  %v637_v39 = vmax.f32 %v1928_v61, 0.0 }
 0x2c5   :  { %v1943_v38 = vadd.f32 %v584_v2, %v1849_v42  ;;  %v635_v5 = vmax.f32 %v1936_v1, 0.0  ;;  %1635 = vmatpush3.bf16.msra.mxu1 %v1691_v41 }
 0x2c6   :  { %v638_v4 = vmax.f32 %v1940_v3, 0.0  ;;  %1628 = vmatprep.subr.bf16.mxu1 %v1692_v28 }
 0x2c7   :  { %v636_v6 = vmax.f32 %v1943_v38, 0.0  ;;  %v1527_v7 = vpop.f32.mrb[28].mxu0 }
 0x2c8   :  { %v605_v57 = vadd.f32 %v1527_v7, %v1871_v11  ;;  %v596_v8 = vpop.f32.mrb[29].mxu0  ;;  %v686_v14 = vpack.c.bf16 %v638_v4, %v637_v39 }
 0x2c9   :  { %v597_v9 = vadd.f32 %v1871_v11, %v596_v8  ;;  %v1528_v40 = vpop.f32.mrb[30].mxu0  ;;  %v685_v42 = vpack.c.bf16 %v636_v6, %v635_v5  ;;  %1636 = vmatpush3.bf16.msra.mxu1 %v1692_v28 }
 0x2ca   :  { %v1956_v10 = vadd.f32 %v1853_v44, %v605_v57  ;;  %v608_v12 = vadd.f32 %v1528_v40, %v1871_v11  ;;  %v599_v13 = vpop.f32.mrb[31].mxu0  ;;  %1629 = vmatprep.subr.bf16.mxu1 %v1985_v30 }
 0x2cb   :  { %v1964_v15 = vadd.f32 %v597_v9, %v1855_v45  ;;  %v600_v16 = vadd.f32 %v1871_v11, %v599_v13  ;;  %1553 = vmatprep.mubr.bf16.mxu1 %v685_v42  ;;  %v1688_v11 = vld [vmem:[#allocation2 + $0x138] sm:$0xff]  }
 0x2cc   :  { %v1968_v18 = vadd.f32 %v1857_v46, %v608_v12  ;;  %1554 = vmatmul.mubr.bf16.gmra.mrb[24].mxu1 %v686_v14  ;;  %v641_v27 = vmax.f32 %v1956_v10, 0.0 }
 0x2cd   :  { %v1971_v44 = vadd.f32 %v600_v16, %v1861_v48  ;;  %v639_v21 = vmax.f32 %v1964_v15, 0.0  ;;  %v1687_v48 = vld [vmem:[#allocation2 + $0x130] sm:$0xff]   ;;  %1637 = vmatpush3.bf16.msra.mxu1 %v1985_v30  ;;  %v1339_v15 = vld [vmem:[%s2082_s2 + $0x4] ss:$0 sm:$0xff] }
 0x2ce   :  { %v642_v19 = vmax.f32 %v1968_v18, 0.0  ;;  %1573 = vmatprep.subr.bf16.mxu0 %v1687_v48 }
 0x2cf   :  { %v640_v29 = vmax.f32 %v1971_v44, 0.0  ;;  %1574 = vmatpush3.bf16.msra.mxu0 %v1687_v48 }
 0x2d0   :  { %v688_v46 = vpack.c.bf16 %v642_v19, %v641_v27  ;;  %1575 = vmatprep.subr.bf16.mxu0 %v1688_v11 }
 0x2d1   :  { %v687_v45 = vpack.c.bf16 %v640_v29, %v639_v21 }
 0x2d3   :  { %1557 = vmatprep.mubr.bf16.mxu1 %v687_v45  ;;  %1576 = vmatpush3.bf16.msra.mxu0 %v1688_v11 }
 0x2d4   :  { %1558 = vmatmul.mubr.bf16.gmra.mrb[28].mxu1 %v688_v46  ;;  %1593 = vmatprep.subr.bf16.mxu0 %v1689_v35 }
 0x38f   :  { %v1547_v49 = vpop.f32.mrb[16].mxu1 }
 0x390   :  { %v786_v51 = vadd.f32 %v1547_v49, %v1992_v47  ;;  %v777_v56 = vpop.f32.mrb[17].mxu1 }
 0x391   :  { %v778_v58 = vadd.f32 %v1992_v47, %v777_v56  ;;  %v1548_v59 = vpop.f32.mrb[18].mxu1 }
 0x392   :  { %v789_v60 = vadd.f32 %v1548_v59, %v1992_v47  ;;  %v780_v34 = vpop.f32.mrb[19].mxu1  ;;  %v842_v62 = vmax.f32 %v786_v51, 0.0 }
 0x393   :  { %v781_v36 = vadd.f32 %v1992_v47, %v780_v34  ;;  %v840_v0 = vmax.f32 %v778_v58, 0.0 }
 0x394   :  { %v843_v63 = vmax.f32 %v789_v60, 0.0 }
 0x395   :  { %v841_v2 = vmax.f32 %v781_v36, 0.0 }
 0x396   :  { %v857_v7 = vpack.c.bf16 %v843_v63, %v842_v62 }
 0x397   :  { %v856_v57 = vpack.c.bf16 %v841_v2, %v840_v0  ;;  %v1551_v8 = vpop.f32.mrb[20].mxu1 }
 0x398   :  { %v802_v9 = vadd.f32 %v1551_v8, %v1992_v47  ;;  %v793_v40 = vpop.f32.mrb[21].mxu1 }
 0x399   :  { %v794_v42 = vadd.f32 %v1992_v47, %v793_v40  ;;  %v1552_v12 = vpop.f32.mrb[22].mxu1  ;;  %1577 = vmatprep.mubr.bf16.mxu0 %v856_v57 }
 0x39a   :  { %v805_v13 = vadd.f32 %v1552_v12, %v1992_v47  ;;  %v796_v14 = vpop.f32.mrb[23].mxu1  ;;  %1578 = vmatmul.mubr.bf16.vlgmr.msra.gmra.mrb[32].mxu0 %v857_v7  ;;  %v846_v45 = vmax.f32 %v802_v9, 0.0 }
 0x39b   :  { %v797_v16 = vadd.f32 %v1992_v47, %v796_v14  ;;  %1594 = vmatpush3.bf16.msra.mxu0 %v1689_v35  ;;  %v844_v48 = vmax.f32 %v794_v42, 0.0 }
 0x39c   :  { %v847_v46 = vmax.f32 %v805_v13, 0.0  ;;  %1595 = vmatprep.subr.bf16.mxu0 %v1690_v37 }
 0x39d   :  { %v845_v11 = vmax.f32 %v797_v16, 0.0 }
 0x39e   :  { %v859_v49 = vpack.c.bf16 %v847_v46, %v846_v45 }
 0x39f   :  { %v858_v51 = vpack.c.bf16 %v845_v11, %v844_v48  ;;  %v1555_v56 = vpop.f32.mrb[24].mxu1  ;;  %1596 = vmatpush3.bf16.msra.mxu0 %v1690_v37 }
 0x3a0   :  { %v818_v58 = vadd.f32 %v1555_v56, %v1992_v47  ;;  %v809_v59 = vpop.f32.mrb[25].mxu1  ;;  %1597 = vmatprep.subr.bf16.mxu0 %v1691_v41 }
 0x3a1   :  { %v810_v60 = vadd.f32 %v1992_v47, %v809_v59  ;;  %v1556_v34 = vpop.f32.mrb[26].mxu1  ;;  %1581 = vmatprep.mubr.bf16.mxu0 %v858_v51  ;;  %v1695_v51 = vld [vmem:[#allocation2 + $0x170] sm:$0xff]  }
 0x3a2   :  { %v821_v36 = vadd.f32 %v1556_v34, %v1992_v47  ;;  %v812_v35 = vpop.f32.mrb[27].mxu1  ;;  %1582 = vmatmul.mubr.bf16.gmra.mrb[36].mxu0 %v859_v49  ;;  %v850_v63 = vmax.f32 %v818_v58, 0.0  ;;  %v1694_v49 = vld [vmem:[#allocation2 + $0x168] sm:$0xff]  }
 0x3a3   :  { %v813_v62 = vadd.f32 %v1992_v47, %v812_v35  ;;  %1598 = vmatpush3.bf16.msra.mxu0 %v1691_v41  ;;  %v848_v2 = vmax.f32 %v810_v60, 0.0  ;;  %1630 = vmatprep.subr.bf16.mxu1 %v1694_v49 }
 0x3a4   :  { %v851_v0 = vmax.f32 %v821_v36, 0.0  ;;  %1599 = vmatprep.subr.bf16.mxu0 %v1692_v28  ;;  %1638 = vmatpush3.bf16.msra.mxu1 %v1694_v49 }
 0x3a5   :  { %v849_v37 = vmax.f32 %v813_v62, 0.0  ;;  %1631 = vmatprep.subr.bf16.mxu1 %v1695_v51 }
 0x3a6   :  { %v861_v7 = vpack.c.bf16 %v851_v0, %v850_v63 }
 0x3a7   :  { %v860_v57 = vpack.c.bf16 %v849_v37, %v848_v2  ;;  %v1559_v8 = vpop.f32.mrb[28].mxu1  ;;  %1600 = vmatpush3.bf16.msra.mxu0 %v1692_v28 }
 0x3a8   :  { %v834_v9 = vadd.f32 %v1559_v8, %v1992_v47  ;;  %v825_v40 = vpop.f32.mrb[29].mxu1  ;;  %1601 = vmatprep.subr.bf16.mxu0 %v1985_v30  ;;  %1639 = vmatpush3.bf16.msra.mxu1 %v1695_v51 }
 0x3a9   :  { %v826_v42 = vadd.f32 %v1992_v47, %v825_v40  ;;  %v1560_v12 = vpop.f32.mrb[30].mxu1  ;;  %1585 = vmatprep.mubr.bf16.mxu0 %v860_v57 }
 0x3aa   :  { %v837_v41 = vadd.f32 %v1560_v12, %v1992_v47  ;;  %v828_v13 = vpop.f32.mrb[31].mxu1  ;;  %1586 = vmatmul.mubr.bf16.gmra.mrb[40].mxu0 %v861_v7  ;;  %v854_v16 = vmax.f32 %v834_v9, 0.0 }
 0x3ab   :  { %v829_v14 = vadd.f32 %v1992_v47, %v828_v13  ;;  %1602 = vmatpush3.bf16.msra.mxu0 %v1985_v30  ;;  %v852_v28 = vmax.f32 %v826_v42, 0.0  ;;  %v1696_v47 = vld [vmem:[#allocation2 + $0x178] sm:$0xff]   ;;  %v2015_v30 = vld [vmem:[%s2082_s2 + $0x3] ss:$0 sm:$0xff]  ;;  %s1752_s2 = smov [#allocation5]  }
 0x3ac   :  { %v855_v45 = vmax.f32 %v837_v41, 0.0  ;;  %1603 = vmatprep.subr.bf16.mxu0 %v1694_v49  ;;  %1632 = vmatprep.subr.bf16.mxu1 %v1696_v47  ;;  %s1270_s23 = sshll.u32 %s1752_s2, 4  ;;  %s1271_s23 = int_to_ptr.vmem [resolvable:$true] %s1270_s23 }
 0x3ad   :  { %v853_v46 = vmax.f32 %v829_v14, 0.0  ;;  %1640 = vmatpush3.bf16.msra.mxu1 %v1696_v47  ;;  %s1723_s24 = scalar_lea.vmem %s1271_s23, 16  ;;  %s1727_s25 = scalar_lea.vmem %s1271_s23, 32 }
 0x3ae   :  { %v863_v48 = vpack.c.bf16 %v855_v45, %v854_v16  ;;  %p1724_p8 = scmp.ne.s32.totalorder %s1271_s23, %s1723_s24  ;;  %p1728_p9 = scmp.lt.s32.totalorder %s1271_s23, %s1271_s23 }
 0x3af   :  { %v862_v11 = vpack.c.bf16 %v853_v46, %v852_v28  ;;  %1604 = vmatpush3.bf16.msra.mxu0 %v1694_v49  ;;  %p1729_p10 = scmp.lt.s32.totalorder %s1727_s25, %s1723_s24 }
 0x3b0   :  { %1605 = vmatprep.subr.bf16.mxu0 %v1695_v51 }
 0x3b1   :  { %1589 = vmatprep.mubr.bf16.mxu0 %v862_v11  ;;  %p1730_p11 = por %p1729_p10, %p1728_p9 }
 0x3b2   :  { %1590 = vmatmul.mubr.bf16.gmra.mrb[44].mxu0 %v863_v48 }
 0x3b3   :  { %1606 = vmatpush3.bf16.msra.mxu0 %v1695_v51  ;;  %p1731_p12 = pnand %p1730_p11, %p1724_p8 }
 0x3b4   :  { %1607 = vmatprep.subr.bf16.mxu0 %v1696_v47 }
 0x3b7   :  { %1608 = vmatpush3.bf16.msra.mxu0 %v1696_v47 }
 0x46d   :  { %v1579_v56 = vpop.f32.mrb[32].mxu0 }
 0x46e   :  { %v961_v58 = vadd.f32 %v1579_v56, %v2015_v30  ;;  %v952_v59 = vpop.f32.mrb[33].mxu0 }
 0x46f   :  { %v953_v60 = vadd.f32 %v2015_v30, %v952_v59  ;;  %v1580_v34 = vpop.f32.mrb[34].mxu0 }
 0x470   :  { %v1017_v36 = vadd.f32 %v961_v58, %v629_v31  ;;  %v964_v35 = vadd.f32 %v1580_v34, %v2015_v30  ;;  %v955_v62 = vpop.f32.mrb[35].mxu0 }
 0x471   :  { %v1015_v63 = vadd.f32 %v953_v60, %v627_v25  ;;  %v956_v0 = vadd.f32 %v2015_v30, %v955_v62 }
 0x472   :  { %v1018_v2 = vadd.f32 %v964_v35, %v630_v24  ;;  %v1033_v7 = vmax.f32 %v1017_v36, 0.0 }
 0x473   :  { %v1016_v37 = vadd.f32 %v956_v0, %v628_v26  ;;  %v1031_v8 = vmax.f32 %v1015_v63, 0.0 }
 0x474   :  { %v1034_v57 = vmax.f32 %v1018_v2, 0.0 }
 0x475   :  { %v1032_v9 = vmax.f32 %v1016_v37, 0.0  ;;  %v1583_v17 = vpop.f32.mrb[36].mxu0 }
 0x476   :  { %v1067_v31 = vpack.c.bf16 %v1034_v57, %v1033_v7  ;;  %v977_v40 = vadd.f32 %v1583_v17, %v2015_v30  ;;  %v968_v42 = vpop.f32.mrb[37].mxu0 }
 0x477   :  { %v969_v20 = vadd.f32 %v2015_v30, %v968_v42  ;;  %v1584_v25 = vpop.f32.mrb[38].mxu0  ;;  %v1066_v12 = vpack.c.bf16 %v1032_v9, %v1031_v8 }
 0x478   :  { %v1021_v22 = vadd.f32 %v977_v40, %v633_v33  ;;  %v980_v24 = vadd.f32 %v1584_v25, %v2015_v30  ;;  %v971_v23 = vpop.f32.mrb[39].mxu0 }
 0x479   :  { %v1019_v26 = vadd.f32 %v969_v20, %v631_v32  ;;  %v972_v41 = vadd.f32 %v2015_v30, %v971_v23  ;;  %1609 = vmatprep.mubr.bf16.mxu0 %v1066_v12 }
 0x47a   :  { %v1022_v13 = vadd.f32 %v980_v24, %v634_v54  ;;  %1610 = vmatmul.mubr.bf16.vlgmr.msra.gmra.mrb[48].mxu0 %v1067_v31  ;;  %v1037_v16 = vmax.f32 %v1021_v22, 0.0 }
 0x47b   :  { %v1020_v14 = vadd.f32 %v972_v41, %v632_v55  ;;  %v1035_v43 = vmax.f32 %v1019_v26, 0.0 }
 0x47c   :  { %v1038_v45 = vmax.f32 %v1022_v13, 0.0 }
 0x47d   :  { %v1036_v33 = vmax.f32 %v1020_v14, 0.0  ;;  %v1587_v28 = vpop.f32.mrb[40].mxu0 }
 0x47e   :  { %v1069_v46 = vpack.c.bf16 %v1038_v45, %v1037_v16  ;;  %v993_v48 = vadd.f32 %v1587_v28, %v2015_v30  ;;  %v984_v50 = vpop.f32.mrb[41].mxu0 }
 0x47f   :  { %v985_v32 = vadd.f32 %v2015_v30, %v984_v50  ;;  %v1588_v11 = vpop.f32.mrb[42].mxu0  ;;  %v1068_v49 = vpack.c.bf16 %v1036_v33, %v1035_v43 }
 0x480   :  { %v1025_v52 = vadd.f32 %v993_v48, %v637_v39  ;;  %v996_v54 = vadd.f32 %v1588_v11, %v2015_v30  ;;  %v987_v53 = vpop.f32.mrb[43].mxu0 }
 0x481   :  { %v1023_v55 = vadd.f32 %v985_v32, %v635_v5  ;;  %v988_v51 = vadd.f32 %v2015_v30, %v987_v53  ;;  %1613 = vmatprep.mubr.bf16.mxu1 %v1068_v49 }
 0x482   :  { %v1026_v47 = vadd.f32 %v996_v54, %v638_v4  ;;  %1614 = vmatmul.mubr.bf16.vlgmr.msra.gmra.mrb[32].mxu1 %v1069_v46  ;;  %v1041_v58 = vmax.f32 %v1025_v52, 0.0 }
 0x483   :  { %v1024_v56 = vadd.f32 %v988_v51, %v636_v6  ;;  %v1039_v61 = vmax.f32 %v1023_v55, 0.0 }
 0x484   :  { %v1042_v59 = vmax.f32 %v1026_v47, 0.0 }
 0x485   :  { %v1040_v39 = vmax.f32 %v1024_v56, 0.0  ;;  %v1591_v60 = vpop.f32.mrb[44].mxu0 }
 0x486   :  { %v1009_v34 = vadd.f32 %v1591_v60, %v2015_v30  ;;  %v1000_v36 = vpop.f32.mrb[45].mxu0  ;;  %v1071_v1 = vpack.c.bf16 %v1042_v59, %v1041_v58 }
 0x487   :  { %v1001_v5 = vadd.f32 %v2015_v30, %v1000_v36  ;;  %v1592_v35 = vpop.f32.mrb[46].mxu0  ;;  %v1070_v62 = vpack.c.bf16 %v1040_v39, %v1039_v61 }
 0x488   :  { %v1029_v3 = vadd.f32 %v1009_v34, %v641_v27  ;;  %v1012_v4 = vadd.f32 %v1592_v35, %v2015_v30  ;;  %v1003_v38 = vpop.f32.mrb[47].mxu0 }
 0x489   :  { %v1027_v6 = vadd.f32 %v1001_v5, %v639_v21  ;;  %v1004_v63 = vadd.f32 %v2015_v30, %v1003_v38  ;;  %1617 = vmatprep.mubr.bf16.mxu1 %v1070_v62 }
 0x48a   :  { %v1030_v0 = vadd.f32 %v1012_v4, %v642_v19  ;;  %1618 = vmatmul.mubr.bf16.gmra.mrb[36].mxu1 %v1071_v1  ;;  %v1045_v37 = vmax.f32 %v1029_v3, 0.0 }
 0x48b   :  { %v1028_v2 = vadd.f32 %v1004_v63, %v640_v29  ;;  %v1043_v10 = vmax.f32 %v1027_v6, 0.0 }
 0x48c   :  { %v1046_v7 = vmax.f32 %v1030_v0, 0.0 }
 0x48d   :  { %v1044_v27 = vmax.f32 %v1028_v2, 0.0 }
 0x48e   :  { %v1073_v57 = vpack.c.bf16 %v1046_v7, %v1045_v37 }
 0x48f   :  { %v1072_v8 = vpack.c.bf16 %v1044_v27, %v1043_v10 }
 0x491   :  { %1621 = vmatprep.mubr.bf16.mxu1 %v1072_v8 }
 0x492   :  { %1622 = vmatmul.mubr.bf16.gmra.mrb[40].mxu1 %v1073_v57 }
 0x54d   :  { %v1611_v21 = vpop.f32.mrb[48].mxu0 }
 0x54e   :  { %v1162_v30 = vpop.f32.mrb[49].mxu0  ;;  %v1171_v31 = vadd.f32 %v1611_v21, %v1339_v15 }
 0x54f   :  { %v1612_v18 = vpop.f32.mrb[50].mxu0  ;;  %v1163_v19 = vadd.f32 %v1339_v15, %v1162_v30 }
 0x550   :  { %v1165_v9 = vpop.f32.mrb[51].mxu0  ;;  %v1174_v20 = vadd.f32 %v1612_v18, %v1339_v15 }
 0x551   :  { %1225 = vxpose.xlu0.b32.start [1/16] (narrow) %v1163_v19, 8  ;;  %v1166_v44 = vadd.f32 %v1339_v15, %v1165_v9 }
 0x555   :  { %v1615_v29 = vpop.f32.mrb[32].mxu1  ;;  %1226 = vxpose.xlu0.b32.cont [2/16] (narrow) %v1166_v44, 8 }
 0x556   :  { %v1178_v17 = vpop.f32.mrb[33].mxu1  ;;  %v1187_v14 = vadd.f32 %v1615_v29, %v1339_v15 }
 0x557   :  { %v1616_v40 = vpop.f32.mrb[34].mxu1  ;;  %v1179_v22 = vadd.f32 %v1339_v15, %v1178_v17 }
 0x558   :  { %v1181_v42 = vpop.f32.mrb[35].mxu1  ;;  %v1190_v43 = vadd.f32 %v1616_v40, %v1339_v15 }
 0x559   :  { %1227 = vxpose.xlu0.b32.cont [3/16] (narrow) %v1171_v31, 8  ;;  %v1182_v26 = vadd.f32 %v1339_v15, %v1181_v42 }
 0x55d   :  { %v1619_v25 = vpop.f32.mrb[36].mxu1  ;;  %1228 = vxpose.xlu0.b32.cont [4/16] (narrow) %v1174_v20, 8 }
 0x55e   :  { %v1194_v12 = vpop.f32.mrb[37].mxu1  ;;  %v1203_v46 = vadd.f32 %v1619_v25, %v1339_v15 }
 0x55f   :  { %v1620_v24 = vpop.f32.mrb[38].mxu1  ;;  %v1195_v33 = vadd.f32 %v1339_v15, %v1194_v12 }
 0x560   :  { %v1197_v23 = vpop.f32.mrb[39].mxu1  ;;  %v1206_v48 = vadd.f32 %v1620_v24, %v1339_v15 }
 0x561   :  { %1229 = vxpose.xlu0.b32.cont [5/16] (narrow) %v1179_v22, 8  ;;  %v1198_v28 = vadd.f32 %v1339_v15, %v1197_v23 }
 0x565   :  { %v1623_v41 = vpop.f32.mrb[40].mxu1  ;;  %1230 = vxpose.xlu0.b32.cont [6/16] (narrow) %v1182_v26, 8 }
 0x566   :  { %v1210_v13 = vpop.f32.mrb[41].mxu1  ;;  %v1219_v11 = vadd.f32 %v1623_v41, %v1339_v15 }
 0x567   :  { %v1624_v16 = vpop.f32.mrb[42].mxu1  ;;  %v1211_v50 = vadd.f32 %v1339_v15, %v1210_v13 }
 0x568   :  { %v1213_v45 = vpop.f32.mrb[43].mxu1  ;;  %v1222_v49 = vadd.f32 %v1624_v16, %v1339_v15 }
 0x569   :  { %1231 = vxpose.xlu0.b32.cont [7/16] (narrow) %v1187_v14, 8  ;;  %v1214_v32 = vadd.f32 %v1339_v15, %v1213_v45 }
 0x56d   :  { %1232 = vxpose.xlu0.b32.cont [8/16] (narrow) %v1190_v43, 8 }
 0x571   :  { %1233 = vxpose.xlu0.b32.cont [9/16] (narrow) %v1195_v33, 8 }
 0x575   :  { %1234 = vxpose.xlu0.b32.cont [10/16] (narrow) %v1198_v28, 8 }
 0x579   :  { %1235 = vxpose.xlu0.b32.cont [11/16] (narrow) %v1203_v46, 8 }
 0x57d   :  { %1236 = vxpose.xlu0.b32.cont [12/16] (narrow) %v1206_v48, 8 }
 0x581   :  { %1237 = vxpose.xlu0.b32.cont [13/16] (narrow) %v1211_v50, 8 }
 0x585   :  { %1238 = vxpose.xlu0.b32.cont [14/16] (narrow) %v1214_v32, 8 }
 0x589   :  { %1239 = vxpose.xlu0.b32.cont [15/16] (narrow) %v1219_v11, 8 }
 0x58d   :  { %1240 = vxpose.xlu0.b32.end [16/16] (narrow) %v1222_v49, 8 }
 0x5d1   :  { %v1241_v52 = vpop.trf.xlu0 }
 0x5d2   :  { %v1348_v54 = vmul.f32 -1.442695, %v1241_v52 }
 0x5d4   :  { %1697 = vpow2.f32 %v1348_v54 }
 0x5de   :  { %v1698_v53 = vpop.eup %1697 }
 0x5df   :  { %v1260_v55 = vadd.f32 1.0, %v1698_v53 }
 0x5e1   :  { %1699 = vrcp.f32 %v1260_v55 }
 0x5eb   :  { %v1700_v51 = vpop.eup %1699 }
 0x5ec   :  { %1263 = vst [vmem:[#allocation5] sm:$0x1] %v1700_v51 }
 0x5ed   :  { %1734 = shalt.err (!%p1731_p12)
}
 0x5ee   :  { %s1735_s1 = scalar_lea.hbm %s2083_s3, 16 }
 0x5ef   :  { %p1736_p13 = scmp.ne.s32.totalorder %s2083_s3, %s1735_s1  ;;  %p1739_p0 = scmp.lt.u32.totalorder %s1735_s1, %s2083_s3 }
 0x5f1   :  { %p1741_p1 = pnand %p1739_p0, %p1736_p13 }
 0x5f3   :  { %1744 = shalt.err (!%p1741_p1)
}
 0x5f4   :  { %1273 = dma.vmem_to_hbm [thread:$0]  %s1271_s23, 16, %s2083_s3, [#allocation4]  }
 0x5f5   :  { %1747 = dma.done.wait [#allocation4], 16  }
 0x5f6   :  { %1748 = vsyncadd [#allocation4], 4294967280 }
 0x5f7   :  { %1277 = vsyncpa [#allocation3], 1 }
 0x5f8   :  { %1278 = vsyncpa [#allocation4], 1 }

// kernel: tpu_custom_call.1
= control target key start
LH: loop header
LB: loop body
LE: loop exit
PB: predicated region body
PF: predicated region fallthrough
CT: control target
= control target key end

     0   :  { %8 = vsyncpa [#allocation3], 0  ;;  %s2080_s0 = inlined_call_operand.vmem [shape: bf16[128,64], index: 0, kind: input, shape index: {}]   ;;  %s2081_s1 = inlined_call_operand.hbm [shape: bf16[6,128,128], index: 1, kind: input, shape index: {}]   ;;  %s2082_s2 = inlined_call_operand.vmem [shape: f32[5,1,128], index: 2, kind: input, shape index: {}]   ;;  %s2083_s3 = inlined_call_operand.hbm [shape: f32[1,1,128], index: 3, kind: output, shape index: {}]  }
   0x1   :  { %9 = vsyncpa [#allocation4], 0  ;;  %s1749_s12 = smov [#allocation2]   ;;  %s1701_s16 = scalar_lea.hbm %s2081_s1, 6144 }
   0x2   :  { %s17_s13 = sshll.u32 %s1749_s12, 4  ;;  %p1702_p0 = scmp.ne.s32.totalorder %s2081_s1, %s1701_s16  ;;  %s18_s13 = int_to_ptr.vmem [resolvable:$true] %s17_s13 }
   0x3   :  { %p1705_p1 = scmp.lt.u32.totalorder %s1701_s16, %s2081_s1 }
   0x5   :  { %p1707_p2 = pnand %p1705_p1, %p1702_p0 }
   0x7   :  { %1710 = shalt.err (!%p1707_p2)
}
   0x8   :  { %s1711_s21 = scalar_lea.vmem %s18_s13, 6144  ;;  %p1716_p4 = scmp.lt.s32.totalorder %s18_s13, %s18_s13 }
   0x9   :  { %p1712_p3 = scmp.ne.s32.totalorder %s18_s13, %s1711_s21  ;;  %p1717_p5 = scmp.lt.s32.totalorder %s1711_s21, %s1711_s21 }
   0xb   :  { %p1718_p6 = por %p1717_p5, %p1716_p4 }
   0xd   :  { %p1719_p7 = pnand %p1718_p6, %p1712_p3 }
   0xf   :  { %1722 = shalt.err (!%p1719_p7)
}
  0x10   :  { %s1750_s22 = smov 64   ;;  %s1751_s23 = smov 4  }
  0x11   :  { %23 = dma.hbm_to_vmem [thread:$0]  %s2081_s1, 6144, %s18_s13, [#allocation3], %s1750_s22, %s1750_s22, %s1751_s23  }
  0x12   :  { %1745 = dma.done.wait [#allocation3], 6144  }
  0x13   :  { %1746 = vsyncadd [#allocation3], 4294961152  ;;  %v1645_v0 = vld [vmem:[#allocation2] sm:$0xff]   ;;  %v1646_v1 = vld [vmem:[#allocation2 + $0x8] sm:$0xff]   ;;  %vm118_vm0 = vcmask 523264  }
  0x14   :  { %1441 = vmatprep.subr.bf16.mxu0 %v1645_v0  ;;  %v1647_v2 = vld [vmem:[#allocation2 + $0x10] sm:$0xff]   ;;  %v1649_v3 = vld [vmem:[%s2080_s0] sm:$0xff]   ;;  %v1648_v4 = vld [vmem:[#allocation2 + $0x18] sm:$0xff]  }
  0x15   :  { %1442 = vmatpush3.bf16.msra.mxu0 %v1645_v0  ;;  %1449 = vmatprep.mubr.msk.bf16.mxu0 %vm118_vm0, %v1649_v3  ;;  %v1657_v5 = vld [vmem:[#allocation2 + $0x40] sm:$0xff]   ;;  %v1658_v6 = vld [vmem:[#allocation2 + $0x48] sm:$0xff]   ;;  %v1651_v8 = vld [vmem:[%s2080_s0 + $0x10] sm:$0xff]  }
  0x16   :  { %1443 = vmatprep.subr.bf16.mxu0 %v1646_v1  ;;  %v1650_v7 = vld [vmem:[%s2080_s0 + $0x8] sm:$0xff]   ;;  %1465 = vmatprep.subr.bf16.mxu1 %v1657_v5  ;;  %v1659_v9 = vld [vmem:[#allocation2 + $0x50] sm:$0xff]   ;;  %v1660_v10 = vld [vmem:[#allocation2 + $0x58] sm:$0xff]  }
  0x17   :  { %1466 = vmatpush3.bf16.msra.mxu1 %v1657_v5  ;;  %v1652_v11 = vld [vmem:[%s2080_s0 + $0x18] sm:$0xff]   ;;  %v1653_v12 = vld [vmem:[%s2080_s0 + $0x20] sm:$0xff]   ;;  %v1662_v14 = vld [vmem:[#allocation2 + $0x68] sm:$0xff]  }
  0x18   :  { %1467 = vmatprep.subr.bf16.mxu1 %v1658_v6  ;;  %v1661_v13 = vld [vmem:[#allocation2 + $0x60] sm:$0xff]   ;;  %v1654_v15 = vld [vmem:[%s2080_s0 + $0x28] sm:$0xff]   ;;  %v1655_v16 = vld [vmem:[%s2080_s0 + $0x30] sm:$0xff]  }
  0x19   :  { %1444 = vmatpush3.bf16.msra.mxu0 %v1646_v1  ;;  %v1663_v17 = vld [vmem:[#allocation2 + $0x70] sm:$0xff]   ;;  %v1656_v18 = vld [vmem:[%s2080_s0 + $0x38] sm:$0xff]   ;;  %v1665_v20 = vld [vmem:[#allocation2 + $0x80] sm:$0xff]  }
  0x1a   :  { %1445 = vmatprep.subr.bf16.mxu0 %v1647_v2  ;;  %v1664_v19 = vld [vmem:[#allocation2 + $0x78] sm:$0xff]   ;;  %v1666_v21 = vld [vmem:[#allocation2 + $0x88] sm:$0xff]   ;;  %v1667_v22 = vld [vmem:[#allocation2 + $0x90] sm:$0xff]  }
  0x1b   :  { %1468 = vmatpush3.bf16.msra.mxu1 %v1658_v6  ;;  %v1668_v23 = vld [vmem:[#allocation2 + $0x98] sm:$0xff]   ;;  %v1669_v24 = vld [vmem:[#allocation2 + $0xa0] sm:$0xff]   ;;  %v1670_v25 = vld [vmem:[#allocation2 + $0xa8] sm:$0xff]  }
  0x1c   :  { %1469 = vmatprep.subr.bf16.mxu1 %v1659_v9  ;;  %v1671_v50 = vld [vmem:[#allocation2 + $0xb0] sm:$0xff]   ;;  %v1672_v51 = vld [vmem:[#allocation2 + $0xb8] sm:$0xff]   ;;  %v1673_v52 = vld [vmem:[#allocation2 + $0xc0] sm:$0xff]  }
  0x1d   :  { %1446 = vmatpush3.bf16.msra.mxu0 %v1647_v2  ;;  %v1674_v53 = vld [vmem:[#allocation2 + $0xc8] sm:$0xff]   ;;  %v1675_v54 = vld [vmem:[#allocation2 + $0xd0] sm:$0xff]   ;;  %v1676_v55 = vld [vmem:[#allocation2 + $0xd8] sm:$0xff]  }
  0x1e   :  { %1447 = vmatprep.subr.bf16.mxu0 %v1648_v4  ;;  %v1677_v56 = vld [vmem:[#allocation2 + $0xe0] sm:$0xff]  }
  0x1f   :  { %1470 = vmatpush3.bf16.msra.mxu1 %v1659_v9  ;;  %v1300_v57 = vld [vmem:[%s2082_s2] ss:$0 sm:$0xff] }
  0x20   :  { %1471 = vmatprep.subr.bf16.mxu1 %v1660_v10 }
  0x21   :  { %1448 = vmatpush3.bf16.msra.mxu0 %v1648_v4 }
  0x22   :  { %1497 = vmatprep.subr.bf16.mxu0 %v1665_v20 }
  0x23   :  { %1472 = vmatpush3.bf16.msra.mxu1 %v1660_v10 }
  0x24   :  { %1450 = vmatmul.mubr.msk.bf16.vlgmr.msra.gmra.mrb[0].mxu0 %vm118_vm0, %v1650_v7  ;;  %1473 = vmatprep.subr.bf16.mxu1 %v1661_v13 }
  0x25   :  { %1453 = vmatprep.mubr.msk.bf16.mxu0 %vm118_vm0, %v1651_v8  ;;  %1498 = vmatpush3.bf16.msra.mxu0 %v1665_v20 }
  0x26   :  { %1499 = vmatprep.subr.bf16.mxu0 %v1666_v21 }
  0x27   :  { %1474 = vmatpush3.bf16.msra.mxu1 %v1661_v13 }
  0x28   :  { %1475 = vmatprep.subr.bf16.mxu1 %v1662_v14 }
  0x29   :  { %1500 = vmatpush3.bf16.msra.mxu0 %v1666_v21 }
  0x2a   :  { %1501 = vmatprep.subr.bf16.mxu0 %v1667_v22 }
  0x2b   :  { %1476 = vmatpush3.bf16.msra.mxu1 %v1662_v14 }
  0x2c   :  { %1454 = vmatmul.mubr.msk.bf16.gmra.mrb[4].mxu0 %vm118_vm0, %v1652_v11  ;;  %1477 = vmatprep.subr.bf16.mxu1 %v1663_v17 }
  0x2d   :  { %1457 = vmatprep.mubr.msk.bf16.mxu0 %vm118_vm0, %v1653_v12  ;;  %1502 = vmatpush3.bf16.msra.mxu0 %v1667_v22 }
  0x2e   :  { %1503 = vmatprep.subr.bf16.mxu0 %v1668_v23 }
  0x2f   :  { %1478 = vmatpush3.bf16.msra.mxu1 %v1663_v17 }
  0x30   :  { %1479 = vmatprep.subr.bf16.mxu1 %v1664_v19 }
  0x31   :  { %1504 = vmatpush3.bf16.msra.mxu0 %v1668_v23 }
  0x32   :  { %1505 = vmatprep.subr.bf16.mxu0 %v1669_v24 }
  0x33   :  { %1480 = vmatpush3.bf16.msra.mxu1 %v1664_v19 }
  0x34   :  { %1458 = vmatmul.mubr.msk.bf16.gmra.mrb[8].mxu0 %vm118_vm0, %v1654_v15  ;;  %1529 = vmatprep.subr.bf16.mxu1 %v1673_v52 }
  0x35   :  { %1461 = vmatprep.mubr.msk.bf16.mxu0 %vm118_vm0, %v1655_v16  ;;  %1506 = vmatpush3.bf16.msra.mxu0 %v1669_v24 }
  0x36   :  { %1507 = vmatprep.subr.bf16.mxu0 %v1670_v25 }
  0x39   :  { %1508 = vmatpush3.bf16.msra.mxu0 %v1670_v25 }
  0x3a   :  { %1509 = vmatprep.subr.bf16.mxu0 %v1671_v50 }
  0x3c   :  { %1462 = vmatmul.mubr.msk.bf16.gmra.mrb[12].mxu0 %vm118_vm0, %v1656_v18 }
  0x3d   :  { %1510 = vmatpush3.bf16.msra.mxu0 %v1671_v50 }
  0x3e   :  { %1511 = vmatprep.subr.bf16.mxu0 %v1672_v51 }
  0x41   :  { %1512 = vmatpush3.bf16.msra.mxu0 %v1672_v51 }
  0xf7   :  { %v1817_v26 = vpop.f32.mrb[0].mxu0 }
  0xf8   :  { %v1819_v27 = vpop.f32.mrb[1].mxu0 }
  0xf9   :  { %v1821_v28 = vpop.f32.mrb[2].mxu0 }
  0xfa   :  { %v278_v29 = vpack.c.bf16 %v1821_v28, %v1817_v26  ;;  %v1825_v30 = vpop.f32.mrb[3].mxu0 }
  0xfb   :  { %v277_v31 = vpack.c.bf16 %v1825_v30, %v1819_v27 }
  0xfd   :  { %1481 = vmatprep.mubr.bf16.mxu1 %v277_v31 }
  0xfe   :  { %1482 = vmatmul.mubr.bf16.vlgmr.msra.gmra.mrb[0].mxu1 %v278_v29 }
  0xff   :  { %v1829_v32 = vpop.f32.mrb[4].mxu0  ;;  %1530 = vmatpush3.bf16.msra.mxu1 %v1673_v52 }
 0x100   :  { %v1831_v33 = vpop.f32.mrb[5].mxu0  ;;  %1531 = vmatprep.subr.bf16.mxu1 %v1674_v53 }
 0x101   :  { %v1833_v34 = vpop.f32.mrb[6].mxu0 }
 0x102   :  { %v280_v35 = vpack.c.bf16 %v1833_v34, %v1829_v32  ;;  %v1837_v36 = vpop.f32.mrb[7].mxu0 }
 0x103   :  { %v279_v37 = vpack.c.bf16 %v1837_v36, %v1831_v33  ;;  %1532 = vmatpush3.bf16.msra.mxu1 %v1674_v53 }
 0x104   :  { %1533 = vmatprep.subr.bf16.mxu1 %v1675_v54 }
 0x105   :  { %1485 = vmatprep.mubr.bf16.mxu1 %v279_v37 }
 0x106   :  { %1486 = vmatmul.mubr.bf16.gmra.mrb[4].mxu1 %v280_v35 }
 0x107   :  { %v1841_v38 = vpop.f32.mrb[8].mxu0  ;;  %1534 = vmatpush3.bf16.msra.mxu1 %v1675_v54 }
 0x108   :  { %v1843_v39 = vpop.f32.mrb[9].mxu0  ;;  %1535 = vmatprep.subr.bf16.mxu1 %v1676_v55 }
 0x109   :  { %v1845_v40 = vpop.f32.mrb[10].mxu0 }
 0x10a   :  { %v282_v41 = vpack.c.bf16 %v1845_v40, %v1841_v38  ;;  %v1849_v42 = vpop.f32.mrb[11].mxu0 }
 0x10b   :  { %v281_v43 = vpack.c.bf16 %v1849_v42, %v1843_v39  ;;  %1536 = vmatpush3.bf16.msra.mxu1 %v1676_v55 }
 0x10c   :  { %1537 = vmatprep.subr.bf16.mxu1 %v1677_v56 }
 0x10d   :  { %1489 = vmatprep.mubr.bf16.mxu1 %v281_v43 }
 0x10e   :  { %1490 = vmatmul.mubr.bf16.gmra.mrb[8].mxu1 %v282_v41 }
 0x10f   :  { %v1853_v44 = vpop.f32.mrb[12].mxu0  ;;  %1538 = vmatpush3.bf16.msra.mxu1 %v1677_v56 }
 0x110   :  { %v1855_v45 = vpop.f32.mrb[13].mxu0 }
 0x111   :  { %v1857_v46 = vpop.f32.mrb[14].mxu0 }
 0x112   :  { %v284_v47 = vpack.c.bf16 %v1857_v46, %v1853_v44  ;;  %v1861_v48 = vpop.f32.mrb[15].mxu0 }
 0x113   :  { %v283_v49 = vpack.c.bf16 %v1861_v48, %v1855_v45 }
 0x115   :  { %1493 = vmatprep.mubr.bf16.mxu1 %v283_v49 }
 0x116   :  { %1494 = vmatmul.mubr.bf16.gmra.mrb[12].mxu1 %v284_v47 }
 0x1d1   :  { %v1483_v58 = vpop.f32.mrb[0].mxu1 }
 0x1d2   :  { %v382_v59 = vadd.f32 %v1483_v58, %v1300_v57  ;;  %v373_v60 = vpop.f32.mrb[1].mxu1 }
 0x1d3   :  { %v374_v61 = vadd.f32 %v1300_v57, %v373_v60  ;;  %v1484_v62 = vpop.f32.mrb[2].mxu1 }
 0x1d4   :  { %v385_v63 = vadd.f32 %v1484_v62, %v1300_v57  ;;  %v376_v0 = vpop.f32.mrb[3].mxu1  ;;  %v438_v2 = vmax.f32 %v382_v59, 0.0 }
 0x1d5   :  { %v377_v1 = vadd.f32 %v1300_v57, %v376_v0  ;;  %v436_v4 = vmax.f32 %v374_v61, 0.0 }
 0x1d6   :  { %v439_v3 = vmax.f32 %v385_v63, 0.0 }
 0x1d7   :  { %v437_v5 = vmax.f32 %v377_v1, 0.0 }
 0x1d8   :  { %v453_v6 = vpack.c.bf16 %v439_v3, %v438_v2  ;;  %v1678_v3 = vld [vmem:[#allocation2 + $0xe8] sm:$0xff]  }
 0x1d9   :  { %v452_v7 = vpack.c.bf16 %v437_v5, %v436_v4  ;;  %v1487_v8 = vpop.f32.mrb[4].mxu1  ;;  %1539 = vmatprep.subr.bf16.mxu1 %v1678_v3  ;;  %v1679_v4 = vld [vmem:[#allocation2 + $0xf0] sm:$0xff]   ;;  %v1680_v5 = vld [vmem:[#allocation2 + $0xf8] sm:$0xff]  }
 0x1da   :  { %v398_v9 = vadd.f32 %v1487_v8, %v1300_v57  ;;  %v389_v10 = vpop.f32.mrb[5].mxu1  ;;  %1540 = vmatpush3.bf16.msra.mxu1 %v1678_v3  ;;  %v1684_v8 = vld [vmem:[#allocation2 + $0x118] sm:$0xff]  }
 0x1db   :  { %v390_v11 = vadd.f32 %v1300_v57, %v389_v10  ;;  %v1488_v12 = vpop.f32.mrb[6].mxu1  ;;  %1513 = vmatprep.mubr.bf16.mxu0 %v452_v7  ;;  %1541 = vmatprep.subr.bf16.mxu1 %v1679_v4  ;;  %v1682_v7 = vld [vmem:[#allocation2 + $0x108] sm:$0xff]  }
 0x1dc   :  { %v442_v13 = vmax.f32 %v398_v9, 0.0  ;;  %v401_v14 = vadd.f32 %v1488_v12, %v1300_v57  ;;  %v392_v15 = vpop.f32.mrb[7].mxu1  ;;  %1514 = vmatmul.mubr.bf16.vlgmr.msra.gmra.mrb[16].mxu0 %v453_v6  ;;  %v1681_v6 = vld [vmem:[#allocation2 + $0x100] sm:$0xff]   ;;  %v1686_v10 = vld [vmem:[#allocation2 + $0x128] sm:$0xff]  }
 0x1dd   :  { %v440_v16 = vmax.f32 %v390_v11, 0.0  ;;  %v393_v17 = vadd.f32 %v1300_v57, %v392_v15  ;;  %1561 = vmatprep.subr.bf16.mxu0 %v1681_v6  ;;  %v1685_v9 = vld [vmem:[#allocation2 + $0x120] sm:$0xff]  }
 0x1de   :  { %v443_v18 = vmax.f32 %v401_v14, 0.0  ;;  %1542 = vmatpush3.bf16.msra.mxu1 %v1679_v4  ;;  %1562 = vmatpush3.bf16.msra.mxu0 %v1681_v6  ;;  %v1871_v11 = vld [vmem:[%s2082_s2 + $0x1] ss:$0 sm:$0xff] }
 0x1df   :  { %v441_v19 = vmax.f32 %v393_v17, 0.0  ;;  %1543 = vmatprep.subr.bf16.mxu1 %v1680_v5  ;;  %1563 = vmatprep.subr.bf16.mxu0 %v1682_v7 }
 0x1e0   :  { %v455_v20 = vpack.c.bf16 %v443_v18, %v442_v13 }
 0x1e1   :  { %v454_v21 = vpack.c.bf16 %v441_v19, %v440_v16  ;;  %v1491_v22 = vpop.f32.mrb[8].mxu1 }
 0x1e2   :  { %v414_v23 = vadd.f32 %v1491_v22, %v1300_v57  ;;  %v405_v24 = vpop.f32.mrb[9].mxu1  ;;  %1544 = vmatpush3.bf16.msra.mxu1 %v1680_v5  ;;  %1564 = vmatpush3.bf16.msra.mxu0 %v1682_v7 }
 0x1e3   :  { %v406_v25 = vadd.f32 %v1300_v57, %v405_v24  ;;  %v1492_v29 = vpop.f32.mrb[10].mxu1  ;;  %1517 = vmatprep.mubr.bf16.mxu0 %v454_v21 }
 0x1e4   :  { %v446_v31 = vmax.f32 %v414_v23, 0.0  ;;  %v417_v35 = vadd.f32 %v1492_v29, %v1300_v57  ;;  %v408_v37 = vpop.f32.mrb[11].mxu1  ;;  %1518 = vmatmul.mubr.bf16.gmra.mrb[20].mxu0 %v455_v20 }
 0x1e5   :  { %v444_v41 = vmax.f32 %v406_v25, 0.0  ;;  %v409_v43 = vadd.f32 %v1300_v57, %v408_v37 }
 0x1e6   :  { %v447_v47 = vmax.f32 %v417_v35, 0.0 }
 0x1e7   :  { %v445_v49 = vmax.f32 %v409_v43, 0.0 }
 0x1e8   :  { %v457_v50 = vpack.c.bf16 %v447_v47, %v446_v31 }
 0x1e9   :  { %v456_v51 = vpack.c.bf16 %v445_v49, %v444_v41  ;;  %v1495_v52 = vpop.f32.mrb[12].mxu1 }
 0x1ea   :  { %v430_v53 = vadd.f32 %v1495_v52, %v1300_v57  ;;  %v421_v54 = vpop.f32.mrb[13].mxu1 }
 0x1eb   :  { %v422_v55 = vadd.f32 %v1300_v57, %v421_v54  ;;  %v1496_v56 = vpop.f32.mrb[14].mxu1  ;;  %1521 = vmatprep.mubr.bf16.mxu0 %v456_v51 }
 0x1ec   :  { %v450_v58 = vmax.f32 %v430_v53, 0.0  ;;  %v433_v59 = vadd.f32 %v1496_v56, %v1300_v57  ;;  %v424_v60 = vpop.f32.mrb[15].mxu1  ;;  %1522 = vmatmul.mubr.bf16.gmra.mrb[24].mxu0 %v457_v50 }
 0x1ed   :  { %v448_v61 = vmax.f32 %v422_v55, 0.0  ;;  %v425_v62 = vadd.f32 %v1300_v57, %v424_v60  ;;  %v1683_v57 = vld [vmem:[#allocation2 + $0x110] sm:$0xff]  }
 0x1ee   :  { %v451_v63 = vmax.f32 %v433_v59, 0.0  ;;  %1565 = vmatprep.subr.bf16.mxu0 %v1683_v57 }
 0x1ef   :  { %v449_v0 = vmax.f32 %v425_v62, 0.0  ;;  %1566 = vmatpush3.bf16.msra.mxu0 %v1683_v57 }
 0x1f0   :  { %v459_v1 = vpack.c.bf16 %v451_v63, %v450_v58  ;;  %1567 = vmatprep.subr.bf16.mxu0 %v1684_v8 }
 0x1f1   :  { %v458_v2 = vpack.c.bf16 %v449_v0, %v448_v61 }
 0x1f3   :  { %1525 = vmatprep.mubr.bf16.mxu0 %v458_v2  ;;  %1568 = vmatpush3.bf16.msra.mxu0 %v1684_v8 }
 0x1f4   :  { %1526 = vmatmul.mubr.bf16.gmra.mrb[28].mxu0 %v459_v1  ;;  %1569 = vmatprep.subr.bf16.mxu0 %v1685_v9 }
 0x1f7   :  { %1570 = vmatpush3.bf16.msra.mxu0 %v1685_v9 }
 0x1f8   :  { %1571 = vmatprep.subr.bf16.mxu0 %v1686_v10 }
 0x1fb   :  { %1572 = vmatpush3.bf16.msra.mxu0 %v1686_v10 }
 0x2af   :  { %v1515_v12 = vpop.f32.mrb[16].mxu0 }
 0x2b0   :  { %v557_v13 = vadd.f32 %v1515_v12, %v1871_v11  ;;  %v548_v14 = vpop.f32.mrb[17].mxu0 }
 0x2b1   :  { %v549_v15 = vadd.f32 %v1871_v11, %v548_v14  ;;  %v1516_v16 = vpop.f32.mrb[18].mxu0 }
 0x2b2   :  { %v1876_v17 = vadd.f32 %v1817_v26, %v557_v13  ;;  %v560_v18 = vadd.f32 %v1516_v16, %v1871_v11  ;;  %v551_v19 = vpop.f32.mrb[19].mxu0 }
 0x2b3   :  { %v1880_v20 = vadd.f32 %v549_v15, %v1819_v27  ;;  %v552_v21 = vadd.f32 %v1871_v11, %v551_v19 }
 0x2b4   :  { %v1884_v22 = vadd.f32 %v1821_v28, %v560_v18  ;;  %v629_v31 = vmax.f32 %v1876_v17, 0.0 }
 0x2b5   :  { %v1887_v23 = vadd.f32 %v552_v21, %v1825_v30  ;;  %v627_v25 = vmax.f32 %v1880_v20, 0.0 }
 0x2b6   :  { %v630_v24 = vmax.f32 %v1884_v22, 0.0 }
 0x2b7   :  { %v628_v26 = vmax.f32 %v1887_v23, 0.0  ;;  %v1519_v29 = vpop.f32.mrb[20].mxu0 }
 0x2b8   :  { %v573_v27 = vadd.f32 %v1519_v29, %v1871_v11  ;;  %v564_v35 = vpop.f32.mrb[21].mxu0  ;;  %v682_v30 = vpack.c.bf16 %v630_v24, %v629_v31 }
 0x2b9   :  { %v565_v37 = vadd.f32 %v1871_v11, %v564_v35  ;;  %v1520_v41 = vpop.f32.mrb[22].mxu0  ;;  %v681_v28 = vpack.c.bf16 %v628_v26, %v627_v25  ;;  %v1689_v35 = vld [vmem:[#allocation2 + $0x140] sm:$0xff]  }
 0x2ba   :  { %v1904_v43 = vadd.f32 %v1829_v32, %v573_v27  ;;  %v576_v47 = vadd.f32 %v1520_v41, %v1871_v11  ;;  %v567_v49 = vpop.f32.mrb[23].mxu0  ;;  %1625 = vmatprep.subr.bf16.mxu1 %v1689_v35  ;;  %v1691_v41 = vld [vmem:[#allocation2 + $0x150] sm:$0xff]  }
 0x2bb   :  { %v1908_v50 = vadd.f32 %v565_v37, %v1831_v33  ;;  %v568_v51 = vadd.f32 %v1871_v11, %v567_v49  ;;  %1545 = vmatprep.mubr.bf16.mxu1 %v681_v28  ;;  %v1690_v37 = vld [vmem:[#allocation2 + $0x148] sm:$0xff]   ;;  %v1692_v28 = vld [vmem:[#allocation2 + $0x158] sm:$0xff]  }
 0x2bc   :  { %v1912_v52 = vadd.f32 %v1833_v34, %v576_v47  ;;  %1546 = vmatmul.mubr.bf16.vlgmr.msra.gmra.mrb[16].mxu1 %v682_v30  ;;  %v633_v33 = vmax.f32 %v1904_v43, 0.0  ;;  %v1985_v30 = vld [vmem:[#allocation2 + $0x160] sm:$0xff]  }
 0x2bd   :  { %v1915_v53 = vadd.f32 %v568_v51, %v1837_v36  ;;  %v631_v32 = vmax.f32 %v1908_v50, 0.0  ;;  %1633 = vmatpush3.bf16.msra.mxu1 %v1689_v35  ;;  %v1992_v47 = vld [vmem:[%s2082_s2 + $0x2] ss:$0 sm:$0xff] }
 0x2be   :  { %v634_v54 = vmax.f32 %v1912_v52, 0.0  ;;  %1626 = vmatprep.subr.bf16.mxu1 %v1690_v37 }
 0x2bf   :  { %v632_v55 = vmax.f32 %v1915_v53, 0.0  ;;  %v1523_v56 = vpop.f32.mrb[24].mxu0 }
 0x2c0   :  { %v589_v58 = vadd.f32 %v1523_v56, %v1871_v11  ;;  %v580_v59 = vpop.f32.mrb[25].mxu0  ;;  %v684_v0 = vpack.c.bf16 %v634_v54, %v633_v33 }
 0x2c1   :  { %v581_v60 = vadd.f32 %v1871_v11, %v580_v59  ;;  %v1524_v34 = vpop.f32.mrb[26].mxu0  ;;  %v683_v36 = vpack.c.bf16 %v632_v55, %v631_v32  ;;  %1634 = vmatpush3.bf16.msra.mxu1 %v1690_v37 }
 0x2c2   :  { %v1928_v61 = vadd.f32 %v1841_v38, %v589_v58  ;;  %v592_v62 = vadd.f32 %v1524_v34, %v1871_v11  ;;  %v583_v63 = vpop.f32.mrb[27].mxu0  ;;  %1627 = vmatprep.subr.bf16.mxu1 %v1691_v41 }
 0x2c3   :  { %v1936_v1 = vadd.f32 %v581_v60, %v1843_v39  ;;  %v584_v2 = vadd.f32 %v1871_v11, %v583_v63  ;;  %1549 = vmatprep.mubr.bf16.mxu1 %v683_v36 }
 0x2c4   :  { %v1940_v3 = vadd.f32 %v1845_v40, %v592_v62  ;;  %1550 = vmatmul.mubr.bf16.gmra.mrb[20].mxu1 %v684_v0  ;;  %v637_v39 = vmax.f32 %v1928_v61, 0.0 }
 0x2c5   :  { %v1943_v38 = vadd.f32 %v584_v2, %v1849_v42  ;;  %v635_v5 = vmax.f32 %v1936_v1, 0.0  ;;  %1635 = vmatpush3.bf16.msra.mxu1 %v1691_v41 }
 0x2c6   :  { %v638_v4 = vmax.f32 %v1940_v3, 0.0  ;;  %1628 = vmatprep.subr.bf16.mxu1 %v1692_v28 }
 0x2c7   :  { %v636_v6 = vmax.f32 %v1943_v38, 0.0  ;;  %v1527_v7 = vpop.f32.mrb[28].mxu0 }
 0x2c8   :  { %v605_v57 = vadd.f32 %v1527_v7, %v1871_v11  ;;  %v596_v8 = vpop.f32.mrb[29].mxu0  ;;  %v686_v14 = vpack.c.bf16 %v638_v4, %v637_v39 }
 0x2c9   :  { %v597_v9 = vadd.f32 %v1871_v11, %v596_v8  ;;  %v1528_v40 = vpop.f32.mrb[30].mxu0  ;;  %v685_v42 = vpack.c.bf16 %v636_v6, %v635_v5  ;;  %1636 = vmatpush3.bf16.msra.mxu1 %v1692_v28 }
 0x2ca   :  { %v1956_v10 = vadd.f32 %v1853_v44, %v605_v57  ;;  %v608_v12 = vadd.f32 %v1528_v40, %v1871_v11  ;;  %v599_v13 = vpop.f32.mrb[31].mxu0  ;;  %1629 = vmatprep.subr.bf16.mxu1 %v1985_v30 }
 0x2cb   :  { %v1964_v15 = vadd.f32 %v597_v9, %v1855_v45  ;;  %v600_v16 = vadd.f32 %v1871_v11, %v599_v13  ;;  %1553 = vmatprep.mubr.bf16.mxu1 %v685_v42  ;;  %v1688_v11 = vld [vmem:[#allocation2 + $0x138] sm:$0xff]  }
 0x2cc   :  { %v1968_v18 = vadd.f32 %v1857_v46, %v608_v12  ;;  %1554 = vmatmul.mubr.bf16.gmra.mrb[24].mxu1 %v686_v14  ;;  %v641_v27 = vmax.f32 %v1956_v10, 0.0 }
 0x2cd   :  { %v1971_v44 = vadd.f32 %v600_v16, %v1861_v48  ;;  %v639_v21 = vmax.f32 %v1964_v15, 0.0  ;;  %v1687_v48 = vld [vmem:[#allocation2 + $0x130] sm:$0xff]   ;;  %1637 = vmatpush3.bf16.msra.mxu1 %v1985_v30  ;;  %v1339_v15 = vld [vmem:[%s2082_s2 + $0x4] ss:$0 sm:$0xff] }
 0x2ce   :  { %v642_v19 = vmax.f32 %v1968_v18, 0.0  ;;  %1573 = vmatprep.subr.bf16.mxu0 %v1687_v48 }
 0x2cf   :  { %v640_v29 = vmax.f32 %v1971_v44, 0.0  ;;  %1574 = vmatpush3.bf16.msra.mxu0 %v1687_v48 }
 0x2d0   :  { %v688_v46 = vpack.c.bf16 %v642_v19, %v641_v27  ;;  %1575 = vmatprep.subr.bf16.mxu0 %v1688_v11 }
 0x2d1   :  { %v687_v45 = vpack.c.bf16 %v640_v29, %v639_v21 }
 0x2d3   :  { %1557 = vmatprep.mubr.bf16.mxu1 %v687_v45  ;;  %1576 = vmatpush3.bf16.msra.mxu0 %v1688_v11 }
 0x2d4   :  { %1558 = vmatmul.mubr.bf16.gmra.mrb[28].mxu1 %v688_v46  ;;  %1593 = vmatprep.subr.bf16.mxu0 %v1689_v35 }
 0x38f   :  { %v1547_v49 = vpop.f32.mrb[16].mxu1 }
 0x390   :  { %v786_v51 = vadd.f32 %v1547_v49, %v1992_v47  ;;  %v777_v56 = vpop.f32.mrb[17].mxu1 }
 0x391   :  { %v778_v58 = vadd.f32 %v1992_v47, %v777_v56  ;;  %v1548_v59 = vpop.f32.mrb[18].mxu1 }
 0x392   :  { %v789_v60 = vadd.f32 %v1548_v59, %v1992_v47  ;;  %v780_v34 = vpop.f32.mrb[19].mxu1  ;;  %v842_v62 = vmax.f32 %v786_v51, 0.0 }
 0x393   :  { %v781_v36 = vadd.f32 %v1992_v47, %v780_v34  ;;  %v840_v0 = vmax.f32 %v778_v58, 0.0 }
 0x394   :  { %v843_v63 = vmax.f32 %v789_v60, 0.0 }
 0x395   :  { %v841_v2 = vmax.f32 %v781_v36, 0.0 }
 0x396   :  { %v857_v7 = vpack.c.bf16 %v843_v63, %v842_v62 }
 0x397   :  { %v856_v57 = vpack.c.bf16 %v841_v2, %v840_v0  ;;  %v1551_v8 = vpop.f32.mrb[20].mxu1 }
 0x398   :  { %v802_v9 = vadd.f32 %v1551_v8, %v1992_v47  ;;  %v793_v40 = vpop.f32.mrb[21].mxu1 }
 0x399   :  { %v794_v42 = vadd.f32 %v1992_v47, %v793_v40  ;;  %v1552_v12 = vpop.f32.mrb[22].mxu1  ;;  %1577 = vmatprep.mubr.bf16.mxu0 %v856_v57 }
 0x39a   :  { %v805_v13 = vadd.f32 %v1552_v12, %v1992_v47  ;;  %v796_v14 = vpop.f32.mrb[23].mxu1  ;;  %1578 = vmatmul.mubr.bf16.vlgmr.msra.gmra.mrb[32].mxu0 %v857_v7  ;;  %v846_v45 = vmax.f32 %v802_v9, 0.0 }
 0x39b   :  { %v797_v16 = vadd.f32 %v1992_v47, %v796_v14  ;;  %1594 = vmatpush3.bf16.msra.mxu0 %v1689_v35  ;;  %v844_v48 = vmax.f32 %v794_v42, 0.0 }
 0x39c   :  { %v847_v46 = vmax.f32 %v805_v13, 0.0  ;;  %1595 = vmatprep.subr.bf16.mxu0 %v1690_v37 }
 0x39d   :  { %v845_v11 = vmax.f32 %v797_v16, 0.0 }
 0x39e   :  { %v859_v49 = vpack.c.bf16 %v847_v46, %v846_v45 }
 0x39f   :  { %v858_v51 = vpack.c.bf16 %v845_v11, %v844_v48  ;;  %v1555_v56 = vpop.f32.mrb[24].mxu1  ;;  %1596 = vmatpush3.bf16.msra.mxu0 %v1690_v37 }
 0x3a0   :  { %v818_v58 = vadd.f32 %v1555_v56, %v1992_v47  ;;  %v809_v59 = vpop.f32.mrb[25].mxu1  ;;  %1597 = vmatprep.subr.bf16.mxu0 %v1691_v41 }
 0x3a1   :  { %v810_v60 = vadd.f32 %v1992_v47, %v809_v59  ;;  %v1556_v34 = vpop.f32.mrb[26].mxu1  ;;  %1581 = vmatprep.mubr.bf16.mxu0 %v858_v51  ;;  %v1695_v51 = vld [vmem:[#allocation2 + $0x170] sm:$0xff]  }
 0x3a2   :  { %v821_v36 = vadd.f32 %v1556_v34, %v1992_v47  ;;  %v812_v35 = vpop.f32.mrb[27].mxu1  ;;  %1582 = vmatmul.mubr.bf16.gmra.mrb[36].mxu0 %v859_v49  ;;  %v850_v63 = vmax.f32 %v818_v58, 0.0  ;;  %v1694_v49 = vld [vmem:[#allocation2 + $0x168] sm:$0xff]  }
 0x3a3   :  { %v813_v62 = vadd.f32 %v1992_v47, %v812_v35  ;;  %1598 = vmatpush3.bf16.msra.mxu0 %v1691_v41  ;;  %v848_v2 = vmax.f32 %v810_v60, 0.0  ;;  %1630 = vmatprep.subr.bf16.mxu1 %v1694_v49 }
 0x3a4   :  { %v851_v0 = vmax.f32 %v821_v36, 0.0  ;;  %1599 = vmatprep.subr.bf16.mxu0 %v1692_v28  ;;  %1638 = vmatpush3.bf16.msra.mxu1 %v1694_v49 }
 0x3a5   :  { %v849_v37 = vmax.f32 %v813_v62, 0.0  ;;  %1631 = vmatprep.subr.bf16.mxu1 %v1695_v51 }
 0x3a6   :  { %v861_v7 = vpack.c.bf16 %v851_v0, %v850_v63 }
 0x3a7   :  { %v860_v57 = vpack.c.bf16 %v849_v37, %v848_v2  ;;  %v1559_v8 = vpop.f32.mrb[28].mxu1  ;;  %1600 = vmatpush3.bf16.msra.mxu0 %v1692_v28 }
 0x3a8   :  { %v834_v9 = vadd.f32 %v1559_v8, %v1992_v47  ;;  %v825_v40 = vpop.f32.mrb[29].mxu1  ;;  %1601 = vmatprep.subr.bf16.mxu0 %v1985_v30  ;;  %1639 = vmatpush3.bf16.msra.mxu1 %v1695_v51 }
 0x3a9   :  { %v826_v42 = vadd.f32 %v1992_v47, %v825_v40  ;;  %v1560_v12 = vpop.f32.mrb[30].mxu1  ;;  %1585 = vmatprep.mubr.bf16.mxu0 %v860_v57 }
 0x3aa   :  { %v837_v41 = vadd.f32 %v1560_v12, %v1992_v47  ;;  %v828_v13 = vpop.f32.mrb[31].mxu1  ;;  %1586 = vmatmul.mubr.bf16.gmra.mrb[40].mxu0 %v861_v7  ;;  %v854_v16 = vmax.f32 %v834_v9, 0.0 }
 0x3ab   :  { %v829_v14 = vadd.f32 %v1992_v47, %v828_v13  ;;  %1602 = vmatpush3.bf16.msra.mxu0 %v1985_v30  ;;  %v852_v28 = vmax.f32 %v826_v42, 0.0  ;;  %v1696_v47 = vld [vmem:[#allocation2 + $0x178] sm:$0xff]   ;;  %v2015_v30 = vld [vmem:[%s2082_s2 + $0x3] ss:$0 sm:$0xff]  ;;  %s1752_s2 = smov [#allocation5]  }
 0x3ac   :  { %v855_v45 = vmax.f32 %v837_v41, 0.0  ;;  %1603 = vmatprep.subr.bf16.mxu0 %v1694_v49  ;;  %1632 = vmatprep.subr.bf16.mxu1 %v1696_v47  ;;  %s1270_s23 = sshll.u32 %s1752_s2, 4  ;;  %s1271_s23 = int_to_ptr.vmem [resolvable:$true] %s1270_s23 }
 0x3ad   :  { %v853_v46 = vmax.f32 %v829_v14, 0.0  ;;  %1640 = vmatpush3.bf16.msra.mxu1 %v1696_v47  ;;  %s1723_s24 = scalar_lea.vmem %s1271_s23, 16  ;;  %s1727_s25 = scalar_lea.vmem %s1271_s23, 32 }
 0x3ae   :  { %v863_v48 = vpack.c.bf16 %v855_v45, %v854_v16  ;;  %p1724_p8 = scmp.ne.s32.totalorder %s1271_s23, %s1723_s24  ;;  %p1728_p9 = scmp.lt.s32.totalorder %s1271_s23, %s1271_s23 }
 0x3af   :  { %v862_v11 = vpack.c.bf16 %v853_v46, %v852_v28  ;;  %1604 = vmatpush3.bf16.msra.mxu0 %v1694_v49  ;;  %p1729_p10 = scmp.lt.s32.totalorder %s1727_s25, %s1723_s24 }
 0x3b0   :  { %1605 = vmatprep.subr.bf16.mxu0 %v1695_v51 }
 0x3b1   :  { %1589 = vmatprep.mubr.bf16.mxu0 %v862_v11  ;;  %p1730_p11 = por %p1729_p10, %p1728_p9 }
 0x3b2   :  { %1590 = vmatmul.mubr.bf16.gmra.mrb[44].mxu0 %v863_v48 }
 0x3b3   :  { %1606 = vmatpush3.bf16.msra.mxu0 %v1695_v51  ;;  %p1731_p12 = pnand %p1730_p11, %p1724_p8 }
 0x3b4   :  { %1607 = vmatprep.subr.bf16.mxu0 %v1696_v47 }
 0x3b7   :  { %1608 = vmatpush3.bf16.msra.mxu0 %v1696_v47 }
 0x46d   :  { %v1579_v56 = vpop.f32.mrb[32].mxu0 }
 0x46e   :  { %v961_v58 = vadd.f32 %v1579_v56, %v2015_v30  ;;  %v952_v59 = vpop.f32.mrb[33].mxu0 }
 0x46f   :  { %v953_v60 = vadd.f32 %v2015_v30, %v952_v59  ;;  %v1580_v34 = vpop.f32.mrb[34].mxu0 }
 0x470   :  { %v1017_v36 = vadd.f32 %v961_v58, %v629_v31  ;;  %v964_v35 = vadd.f32 %v1580_v34, %v2015_v30  ;;  %v955_v62 = vpop.f32.mrb[35].mxu0 }
 0x471   :  { %v1015_v63 = vadd.f32 %v953_v60, %v627_v25  ;;  %v956_v0 = vadd.f32 %v2015_v30, %v955_v62 }
 0x472   :  { %v1018_v2 = vadd.f32 %v964_v35, %v630_v24  ;;  %v1033_v7 = vmax.f32 %v1017_v36, 0.0 }
 0x473   :  { %v1016_v37 = vadd.f32 %v956_v0, %v628_v26  ;;  %v1031_v8 = vmax.f32 %v1015_v63, 0.0 }
 0x474   :  { %v1034_v57 = vmax.f32 %v1018_v2, 0.0 }
 0x475   :  { %v1032_v9 = vmax.f32 %v1016_v37, 0.0  ;;  %v1583_v17 = vpop.f32.mrb[36].mxu0 }
 0x476   :  { %v1067_v31 = vpack.c.bf16 %v1034_v57, %v1033_v7  ;;  %v977_v40 = vadd.f32 %v1583_v17, %v2015_v30  ;;  %v968_v42 = vpop.f32.mrb[37].mxu0 }
 0x477   :  { %v969_v20 = vadd.f32 %v2015_v30, %v968_v42  ;;  %v1584_v25 = vpop.f32.mrb[38].mxu0  ;;  %v1066_v12 = vpack.c.bf16 %v1032_v9, %v1031_v8 }
 0x478   :  { %v1021_v22 = vadd.f32 %v977_v40, %v633_v33  ;;  %v980_v24 = vadd.f32 %v1584_v25, %v2015_v30  ;;  %v971_v23 = vpop.f32.mrb[39].mxu0 }
 0x479   :  { %v1019_v26 = vadd.f32 %v969_v20, %v631_v32  ;;  %v972_v41 = vadd.f32 %v2015_v30, %v971_v23  ;;  %1609 = vmatprep.mubr.bf16.mxu0 %v1066_v12 }
 0x47a   :  { %v1022_v13 = vadd.f32 %v980_v24, %v634_v54  ;;  %1610 = vmatmul.mubr.bf16.vlgmr.msra.gmra.mrb[48].mxu0 %v1067_v31  ;;  %v1037_v16 = vmax.f32 %v1021_v22, 0.0 }
 0x47b   :  { %v1020_v14 = vadd.f32 %v972_v41, %v632_v55  ;;  %v1035_v43 = vmax.f32 %v1019_v26, 0.0 }
 0x47c   :  { %v1038_v45 = vmax.f32 %v1022_v13, 0.0 }
 0x47d   :  { %v1036_v33 = vmax.f32 %v1020_v14, 0.0  ;;  %v1587_v28 = vpop.f32.mrb[40].mxu0 }
 0x47e   :  { %v1069_v46 = vpack.c.bf16 %v1038_v45, %v1037_v16  ;;  %v993_v48 = vadd.f32 %v1587_v28, %v2015_v30  ;;  %v984_v50 = vpop.f32.mrb[41].mxu0 }
 0x47f   :  { %v985_v32 = vadd.f32 %v2015_v30, %v984_v50  ;;  %v1588_v11 = vpop.f32.mrb[42].mxu0  ;;  %v1068_v49 = vpack.c.bf16 %v1036_v33, %v1035_v43 }
 0x480   :  { %v1025_v52 = vadd.f32 %v993_v48, %v637_v39  ;;  %v996_v54 = vadd.f32 %v1588_v11, %v2015_v30  ;;  %v987_v53 = vpop.f32.mrb[43].mxu0 }
 0x481   :  { %v1023_v55 = vadd.f32 %v985_v32, %v635_v5  ;;  %v988_v51 = vadd.f32 %v2015_v30, %v987_v53  ;;  %1613 = vmatprep.mubr.bf16.mxu1 %v1068_v49 }
 0x482   :  { %v1026_v47 = vadd.f32 %v996_v54, %v638_v4  ;;  %1614 = vmatmul.mubr.bf16.vlgmr.msra.gmra.mrb[32].mxu1 %v1069_v46  ;;  %v1041_v58 = vmax.f32 %v1025_v52, 0.0 }
 0x483   :  { %v1024_v56 = vadd.f32 %v988_v51, %v636_v6  ;;  %v1039_v61 = vmax.f32 %v1023_v55, 0.0 }
 0x484   :  { %v1042_v59 = vmax.f32 %v1026_v47, 0.0 }
 0x485   :  { %v1040_v39 = vmax.f32 %v1024_v56, 0.0  ;;  %v1591_v60 = vpop.f32.mrb[44].mxu0 }
 0x486   :  { %v1009_v34 = vadd.f32 %v1591_v60, %v2015_v30  ;;  %v1000_v36 = vpop.f32.mrb[45].mxu0  ;;  %v1071_v1 = vpack.c.bf16 %v1042_v59, %v1041_v58 }
 0x487   :  { %v1001_v5 = vadd.f32 %v2015_v30, %v1000_v36  ;;  %v1592_v35 = vpop.f32.mrb[46].mxu0  ;;  %v1070_v62 = vpack.c.bf16 %v1040_v39, %v1039_v61 }
 0x488   :  { %v1029_v3 = vadd.f32 %v1009_v34, %v641_v27  ;;  %v1012_v4 = vadd.f32 %v1592_v35, %v2015_v30  ;;  %v1003_v38 = vpop.f32.mrb[47].mxu0 }
 0x489   :  { %v1027_v6 = vadd.f32 %v1001_v5, %v639_v21  ;;  %v1004_v63 = vadd.f32 %v2015_v30, %v1003_v38  ;;  %1617 = vmatprep.mubr.bf16.mxu1 %v1070_v62 }
 0x48a   :  { %v1030_v0 = vadd.f32 %v1012_v4, %v642_v19  ;;  %1618 = vmatmul.mubr.bf16.gmra.mrb[36].mxu1 %v1071_v1  ;;  %v1045_v37 = vmax.f32 %v1029_v3, 0.0 }
 0x48b   :  { %v1028_v2 = vadd.f32 %v1004_v63, %v640_v29  ;;  %v1043_v10 = vmax.f32 %v1027_v6, 0.0 }
 0x48c   :  { %v1046_v7 = vmax.f32 %v1030_v0, 0.0 }
 0x48d   :  { %v1044_v27 = vmax.f32 %v1028_v2, 0.0 }
 0x48e   :  { %v1073_v57 = vpack.c.bf16 %v1046_v7, %v1045_v37 }
 0x48f   :  { %v1072_v8 = vpack.c.bf16 %v1044_v27, %v1043_v10 }
 0x491   :  { %1621 = vmatprep.mubr.bf16.mxu1 %v1072_v8 }
 0x492   :  { %1622 = vmatmul.mubr.bf16.gmra.mrb[40].mxu1 %v1073_v57 }
 0x54d   :  { %v1611_v21 = vpop.f32.mrb[48].mxu0 }
 0x54e   :  { %v1162_v30 = vpop.f32.mrb[49].mxu0  ;;  %v1171_v31 = vadd.f32 %v1611_v21, %v1339_v15 }
 0x54f   :  { %v1612_v18 = vpop.f32.mrb[50].mxu0  ;;  %v1163_v19 = vadd.f32 %v1339_v15, %v1162_v30 }
 0x550   :  { %v1165_v9 = vpop.f32.mrb[51].mxu0  ;;  %v1174_v20 = vadd.f32 %v1612_v18, %v1339_v15 }
 0x551   :  { %1225 = vxpose.xlu0.b32.start [1/16] (narrow) %v1163_v19, 8  ;;  %v1166_v44 = vadd.f32 %v1339_v15, %v1165_v9 }
 0x555   :  { %v1615_v29 = vpop.f32.mrb[32].mxu1  ;;  %1226 = vxpose.xlu0.b32.cont [2/16] (narrow) %v1166_v44, 8 }
 0x556   :  { %v1178_v17 = vpop.f32.mrb[33].mxu1  ;;  %v1187_v14 = vadd.f32 %v1615_v29, %v1339_v15 }
 0x557   :  { %v1616_v40 = vpop.f32.mrb[34].mxu1  ;;  %v1179_v22 = vadd.f32 %v1339_v15, %v1178_v17 }
 0x558   :  { %v1181_v42 = vpop.f32.mrb[35].mxu1  ;;  %v1190_v43 = vadd.f32 %v1616_v40, %v1339_v15 }
 0x559   :  { %1227 = vxpose.xlu0.b32.cont [3/16] (narrow) %v1171_v31, 8  ;;  %v1182_v26 = vadd.f32 %v1339_v15, %v1181_v42 }
 0x55d   :  { %v1619_v25 = vpop.f32.mrb[36].mxu1  ;;  %1228 = vxpose.xlu0.b32.cont [4/16] (narrow) %v1174_v20, 8 }
 0x55e   :  { %v1194_v12 = vpop.f32.mrb[37].mxu1  ;;  %v1203_v46 = vadd.f32 %v1619_v25, %v1339_v15 }
 0x55f   :  { %v1620_v24 = vpop.f32.mrb[38].mxu1  ;;  %v1195_v33 = vadd.f32 %v1339_v15, %v1194_v12 }
 0x560   :  { %v1197_v23 = vpop.f32.mrb[39].mxu1  ;;  %v1206_v48 = vadd.f32 %v1620_v24, %v1339_v15 }
 0x561   :  { %1229 = vxpose.xlu0.b32.cont [5/16] (narrow) %v1179_v22, 8  ;;  %v1198_v28 = vadd.f32 %v1339_v15, %v1197_v23 }
 0x565   :  { %v1623_v41 = vpop.f32.mrb[40].mxu1  ;;  %1230 = vxpose.xlu0.b32.cont [6/16] (narrow) %v1182_v26, 8 }
 0x566   :  { %v1210_v13 = vpop.f32.mrb[41].mxu1  ;;  %v1219_v11 = vadd.f32 %v1623_v41, %v1339_v15 }
 0x567   :  { %v1624_v16 = vpop.f32.mrb[42].mxu1  ;;  %v1211_v50 = vadd.f32 %v1339_v15, %v1210_v13 }
 0x568   :  { %v1213_v45 = vpop.f32.mrb[43].mxu1  ;;  %v1222_v49 = vadd.f32 %v1624_v16, %v1339_v15 }
 0x569   :  { %1231 = vxpose.xlu0.b32.cont [7/16] (narrow) %v1187_v14, 8  ;;  %v1214_v32 = vadd.f32 %v1339_v15, %v1213_v45 }
 0x56d   :  { %1232 = vxpose.xlu0.b32.cont [8/16] (narrow) %v1190_v43, 8 }
 0x571   :  { %1233 = vxpose.xlu0.b32.cont [9/16] (narrow) %v1195_v33, 8 }
 0x575   :  { %1234 = vxpose.xlu0.b32.cont [10/16] (narrow) %v1198_v28, 8 }
 0x579   :  { %1235 = vxpose.xlu0.b32.cont [11/16] (narrow) %v1203_v46, 8 }
 0x57d   :  { %1236 = vxpose.xlu0.b32.cont [12/16] (narrow) %v1206_v48, 8 }
 0x581   :  { %1237 = vxpose.xlu0.b32.cont [13/16] (narrow) %v1211_v50, 8 }
 0x585   :  { %1238 = vxpose.xlu0.b32.cont [14/16] (narrow) %v1214_v32, 8 }
 0x589   :  { %1239 = vxpose.xlu0.b32.cont [15/16] (narrow) %v1219_v11, 8 }
 0x58d   :  { %1240 = vxpose.xlu0.b32.end [16/16] (narrow) %v1222_v49, 8 }
 0x5d1   :  { %v1241_v52 = vpop.trf.xlu0 }
 0x5d2   :  { %v1348_v54 = vmul.f32 -1.442695, %v1241_v52 }
 0x5d4   :  { %1697 = vpow2.f32 %v1348_v54 }
 0x5de   :  { %v1698_v53 = vpop.eup %1697 }
 0x5df   :  { %v1260_v55 = vadd.f32 1.0, %v1698_v53 }
 0x5e1   :  { %1699 = vrcp.f32 %v1260_v55 }
 0x5eb   :  { %v1700_v51 = vpop.eup %1699 }
 0x5ec   :  { %1263 = vst [vmem:[#allocation5] sm:$0x1] %v1700_v51 }
 0x5ed   :  { %1734 = shalt.err (!%p1731_p12)
}
 0x5ee   :  { %s1735_s1 = scalar_lea.hbm %s2083_s3, 16 }
 0x5ef   :  { %p1736_p13 = scmp.ne.s32.totalorder %s2083_s3, %s1735_s1  ;;  %p1739_p0 = scmp.lt.u32.totalorder %s1735_s1, %s2083_s3 }
 0x5f1   :  { %p1741_p1 = pnand %p1739_p0, %p1736_p13 }
 0x5f3   :  { %1744 = shalt.err (!%p1741_p1)
}
 0x5f4   :  { %1273 = dma.vmem_to_hbm [thread:$0]  %s1271_s23, 16, %s2083_s3, [#allocation4]  }
 0x5f5   :  { %1747 = dma.done.wait [#allocation4], 16  }
 0x5f6   :  { %1748 = vsyncadd [#allocation4], 4294967280 }
 0x5f7   :  { %1277 = vsyncpa [#allocation3], 1 }
 0x5f8   :  { %1278 = vsyncpa [#allocation4], 1 }

</bundles_post_ra>
